<compile_context>
chip_gen: v5e
topology: v5e:2x2
jax: 0.10.0
libtpu: 0.0.40
codegen_flags: <defaults>
</compile_context>

<pallas_src>
import functools

import numpy as np
import jax
import jax.numpy as jnp
from jax import lax
from jax.experimental import pallas as pl
from jax.experimental.pallas import tpu as pltpu

_LANE = 128
_SUBLANE = 8


def _round_up(n, m):
    return ((n + m - 1) // m) * m


# ----------------------------------------------------------------------------
# One-time parameter preprocessing (outside the per-forward path)
# ----------------------------------------------------------------------------
def _fold_conv(weight, in_h, in_w, stride, pad, in_order):
    """Fold a (Cout, Cin, K, K) conv into a dense (H*W*Cin, OH*OW*Cout) matrix.

    in_order = "chw":  rows match a flattened NCHW image  (ci*H*W + h*W + w)
    in_order = "hwc":  rows match channel-last activations ((h*W + w)*Cin + ci)
    Columns are (oh*OW + ow)*Cout + co  (pixel-major / channel-minor).
    Zero rows/entries encode the zero padding.
    """
    w_np = np.asarray(weight, np.float32)
    cout, cin, k, _ = w_np.shape
    oh = (in_h + 2 * pad - k) // stride + 1
    ow = (in_w + 2 * pad - k) // stride + 1
    A = np.zeros((in_h * in_w * cin, oh * ow * cout), np.float32)
    ci_idx = np.arange(cin)
    co_idx = np.arange(cout)
    for o_h in range(oh):
        for o_w in range(ow):
            col0 = (o_h * ow + o_w) * cout
            for dh in range(k):
                sh = stride * o_h + dh - pad
                if not (0 <= sh < in_h):
                    continue
                for dw in range(k):
                    sw = stride * o_w + dw - pad
                    if not (0 <= sw < in_w):
                        continue
                    if in_order == "chw":
                        rows = ci_idx * (in_h * in_w) + sh * in_w + sw
                    else:
                        rows = (sh * in_w + sw) * cin + ci_idx
                    A[rows[:, None], col0 + co_idx[None, :]] = w_np[:, :, dh, dw].T
    return A, oh, ow


def prepare_encoder(params, image_size, compute_dtype=jnp.bfloat16):
    """Build kernel-ready folded matrices from PyTorch-layout conv weights."""
    layers = []
    h = w = image_size
    in_c = None
    for li, (wgt, b) in enumerate(params["convs"]):
        order = "chw" if li == 0 else "hwc"
        A, oh, ow = _fold_conv(wgt, h, w, stride=2, pad=1, in_order=order)
        cout = wgt.shape[0]
        bias_row = np.tile(np.asarray(b, np.float32), oh * ow).reshape(1, -1)
        layers.append((jnp.asarray(A, compute_dtype),
                       jnp.asarray(bias_row, jnp.float32)))
        h, w = oh, ow
        in_c = cout

    wo = np.asarray(params["out_w"], np.float32)     # (c_dim, Cin, ks, ks), no bias
    c_dim, cin, ks, _ = wo.shape
    assert ks == h and ks == w, "final conv kernel must cover the feature map"
    assert cin == in_c
    # A_out[(ih*ks+iw)*Cin + ci, co] = wo[co, ci, ih, iw]
    a_out = np.transpose(wo, (2, 3, 1, 0)).reshape(ks * ks * cin, c_dim)
    n_out = _round_up(c_dim, _LANE)                  # lane-dense output store
    a_out = np.pad(a_out, ((0, 0), (0, n_out - c_dim)))

    n_in = image_size * image_size * params["convs"][0][0].shape[1]
    return {"layers": layers,
            "a_out": jnp.asarray(a_out, compute_dtype),
            "c_dim": c_dim,
            "n_in": n_in}


# ----------------------------------------------------------------------------
# Fused encoder kernel: one grid step per batch tile
# ----------------------------------------------------------------------------
def _encoder_kernel(num_layers, *refs):
    x_ref = refs[0]
    o_ref = refs[-1]
    a_out_ref = refs[1 + 2 * num_layers]

    h = x_ref[...].astype(jnp.bfloat16)              # (Bt, H*W*Cin)
    for l in range(num_layers):
        a_ref = refs[1 + 2 * l]
        b_ref = refs[2 + 2 * l]
        acc = jnp.dot(h, a_ref[...], preferred_element_type=jnp.float32)
        h = jnp.maximum(acc + b_ref[...], 0.0).astype(jnp.bfloat16)

    out = jnp.dot(h, a_out_ref[...], preferred_element_type=jnp.float32)
    o_ref[...] = out.astype(o_ref.dtype)             # (Bt, 128) unmasked store


def encoder_forward_pallas(x_nchw, prep):
    B = x_nchw.shape[0]
    n_in = prep["n_in"]
    num_layers = len(prep["layers"])

    # Only per-forward glue: flatten NCHW (a free reshape) + pad batch rows to
    # a sublane multiple.  The NCHW permutation lives inside A_1.
    x_flat = x_nchw.reshape(B, -1)
    assert x_flat.shape[1] == n_in, (x_flat.shape, n_in)
    b_tile = min(_round_up(B, _SUBLANE), 128)
    b_pad = _round_up(B, b_tile)
    if b_pad != B:
        x_flat = jnp.pad(x_flat, ((0, b_pad - B), (0, 0)))
    grid = (b_pad // b_tile,)

    inputs = [x_flat]
    in_specs = [pl.BlockSpec((b_tile, n_in), lambda i: (i, 0))]
    for (A, brow) in prep["layers"]:
        inputs += [A, brow]
        in_specs += [pl.BlockSpec(A.shape, lambda i: (0, 0)),
                     pl.BlockSpec(brow.shape, lambda i: (0, 0))]
    inputs.append(prep["a_out"])
    in_specs.append(pl.BlockSpec(prep["a_out"].shape, lambda i: (0, 0)))

    n_out = prep["a_out"].shape[-1]
    out_shape = jax.ShapeDtypeStruct((b_pad, n_out), jnp.float32)
    out_spec = pl.BlockSpec((b_tile, n_out), lambda i: (i, 0))

    # Advisory cost estimate for XLA scheduling.
    flops = 2 * b_pad * prep["a_out"].shape[0] * n_out
    for (A, _) in prep["layers"]:
        flops += 2 * b_pad * A.shape[0] * A.shape[1]
    bytes_accessed = sum(int(a.size) * a.dtype.itemsize for a in inputs)
    bytes_accessed += b_pad * n_out * 4

    out = pl.pallas_call(
        functools.partial(_encoder_kernel, num_layers),
        out_shape=out_shape,
        grid=grid,
        in_specs=in_specs,
        out_specs=out_spec,
        compiler_params=pltpu.CompilerParams(
            dimension_semantics=("parallel",)),
        cost_estimate=pl.CostEstimate(
            flops=int(flops), transcendentals=0,
            bytes_accessed=int(bytes_accessed)),
    )(*inputs)
    return out[:B, :prep["c_dim"]]                   # (B, c_dim)


# ----------------------------------------------------------------------------
# Parameters + pure-JAX reference
# ----------------------------------------------------------------------------
def init_encoder_params(key, image_size=16, conv_dim=8, c_dim=5, repeat_num=2):
    params = {"convs": []}
    in_c = 3
    out_c = conv_dim
    for _ in range(repeat_num):
        key, kw, kb = jax.random.split(key, 3)
        w = jax.random.normal(kw, (out_c, in_c, 4, 4), jnp.float32) * 0.05
        b = jax.random.normal(kb, (out_c,), jnp.float32) * 0.05
        params["convs"].append((w, b))
        in_c = out_c
        out_c = out_c * 2
    ksize = image_size // (2 ** repeat_num)
    key, kw = jax.random.split(key)
    params["out_w"] = jax.random.normal(kw, (c_dim, in_c, ksize, ksize),
                                        jnp.float32) * 0.05
    return params


def encoder_forward_ref(x_nchw, params):
    """Pure-JAX f32 reference (lax.conv) for the correctness check."""
    h = x_nchw
    for (w, b) in params["convs"]:
        h = lax.conv_general_dilated(
            h, w, window_strides=(2, 2), padding=((1, 1), (1, 1)),
            dimension_numbers=("NCHW", "OIHW", "NCHW"))
        h = jnp.maximum(h + b[None, :, None, None], 0.0)
    c = lax.conv_general_dilated(
        h, params["out_w"], window_strides=(1, 1), padding=((0, 0), (0, 0)),
        dimension_numbers=("NCHW", "OIHW", "NCHW"))
    return c.reshape(c.shape[0], -1)


if __name__ == "__main__":
    key = jax.random.PRNGKey(0)
    key, kx = jax.random.split(key)

    IMAGE_SIZE, CONV_DIM, C_DIM, REPEAT_NUM, BATCH = 16, 8, 5, 2, 2
    x = jax.random.normal(kx, (BATCH, 3, IMAGE_SIZE, IMAGE_SIZE), jnp.float32)

    params = init_encoder_params(key, IMAGE_SIZE, CONV_DIM, C_DIM, REPEAT_NUM)
    prep = prepare_encoder(params, IMAGE_SIZE)

    fwd = jax.jit(functools.partial(encoder_forward_pallas, prep=prep))
    out = jax.block_until_ready(fwd(x))
    ref = jax.block_until_ready(encoder_forward_ref(x, params))

    assert out.shape == (BATCH, C_DIM), out.shape
    # bf16 MXU path: tolerance loosened vs. the old f32 kernel (gather is now
    # folded exactly; only weight/activation rounding differs from the ref).
    assert jnp.allclose(out, ref, atol=2e-2, rtol=2e-2), (out, ref)
    print("KERNEL_OK")
</pallas_src>

<mosaic_0001>
module attributes {stable_mosaic.version = 11 : i64} {
  func.func @_encoder_kernel(%arg0: i32, %arg1: memref<8x768xf32, #tpu.memory_space<vmem>>, %arg2: memref<768x512xbf16, #tpu.memory_space<vmem>>, %arg3: memref<1x512xf32, #tpu.memory_space<vmem>>, %arg4: memref<512x256xbf16, #tpu.memory_space<vmem>>, %arg5: memref<1x256xf32, #tpu.memory_space<vmem>>, %arg6: memref<256x128xbf16, #tpu.memory_space<vmem>>, %arg7: memref<8x128xf32, #tpu.memory_space<vmem>>) attributes {dimension_semantics = [#tpu.dimension_semantics<parallel>], iteration_bounds = array<i64: 1>, scalar_prefetch = 0 : i64, scratch_operands = 0 : i64, tpu.core_type = #tpu.core_type<tc>, window_params = [{transform_indices = @transform_0, window_bounds = array<i64: 8, 768>}, {pipeline_mode = #tpu.pipeline_mode<synchronous>, transform_indices = @transform_1, window_bounds = array<i64: 768, 512>}, {pipeline_mode = #tpu.pipeline_mode<synchronous>, transform_indices = @transform_2, window_bounds = array<i64: 1, 512>}, {pipeline_mode = #tpu.pipeline_mode<synchronous>, transform_indices = @transform_3, window_bounds = array<i64: 512, 256>}, {pipeline_mode = #tpu.pipeline_mode<synchronous>, transform_indices = @transform_4, window_bounds = array<i64: 1, 256>}, {pipeline_mode = #tpu.pipeline_mode<synchronous>, transform_indices = @transform_5, window_bounds = array<i64: 256, 128>}, {transform_indices = @transform_6, window_bounds = array<i64: 8, 128>}]} {
    %c0 = arith.constant 0 : index
    %c0_0 = arith.constant 0 : index
    %0 = vector.load %arg1[%c0, %c0_0] : memref<8x768xf32, #tpu.memory_space<vmem>>, vector<8x768xf32>
    %1 = arith.truncf %0 : vector<8x768xf32> to vector<8x768xbf16>
    %c0_1 = arith.constant 0 : index
    %c0_2 = arith.constant 0 : index
    %2 = vector.load %arg2[%c0_1, %c0_2] : memref<768x512xbf16, #tpu.memory_space<vmem>>, vector<768x512xbf16>
    %cst = arith.constant dense<0.000000e+00> : vector<8x512xf32>
    %3 = tpu.matmul %1, %2, %cst {dimension_numbers = #tpu.dot_dimension_numbers<[1], [0], [0], [1], [0, 0, 1, 1], [], []>} : vector<8x768xbf16>, vector<768x512xbf16>, vector<8x512xf32> -> vector<8x512xf32>
    %c0_3 = arith.constant 0 : index
    %c0_4 = arith.constant 0 : index
    %4 = vector.load %arg3[%c0_3, %c0_4] : memref<1x512xf32, #tpu.memory_space<vmem>>, vector<1x512xf32>
    %5 = vector.broadcast %4 : vector<1x512xf32> to vector<8x512xf32>
    %6 = arith.addf %3, %5 : vector<8x512xf32>
    %cst_5 = arith.constant 0.000000e+00 : f32
    %7 = vector.broadcast %cst_5 : f32 to vector<8x512xf32>
    %8 = arith.maximumf %6, %7 : vector<8x512xf32>
    %9 = arith.truncf %8 : vector<8x512xf32> to vector<8x512xbf16>
    %c0_6 = arith.constant 0 : index
    %c0_7 = arith.constant 0 : index
    %10 = vector.load %arg4[%c0_6, %c0_7] : memref<512x256xbf16, #tpu.memory_space<vmem>>, vector<512x256xbf16>
    %cst_8 = arith.constant dense<0.000000e+00> : vector<8x256xf32>
    %11 = tpu.matmul %9, %10, %cst_8 {dimension_numbers = #tpu.dot_dimension_numbers<[1], [0], [0], [1], [0, 0, 1, 1], [], []>} : vector<8x512xbf16>, vector<512x256xbf16>, vector<8x256xf32> -> vector<8x256xf32>
    %c0_9 = arith.constant 0 : index
    %c0_10 = arith.constant 0 : index
    %12 = vector.load %arg5[%c0_9, %c0_10] : memref<1x256xf32, #tpu.memory_space<vmem>>, vector<1x256xf32>
    %13 = vector.broadcast %12 : vector<1x256xf32> to vector<8x256xf32>
    %14 = arith.addf %11, %13 : vector<8x256xf32>
    %cst_11 = arith.constant 0.000000e+00 : f32
    %15 = vector.broadcast %cst_11 : f32 to vector<8x256xf32>
    %16 = arith.maximumf %14, %15 : vector<8x256xf32>
    %17 = arith.truncf %16 : vector<8x256xf32> to vector<8x256xbf16>
    %c0_12 = arith.constant 0 : index
    %c0_13 = arith.constant 0 : index
    %18 = vector.load %arg6[%c0_12, %c0_13] : memref<256x128xbf16, #tpu.memory_space<vmem>>, vector<256x128xbf16>
    %cst_14 = arith.constant dense<0.000000e+00> : vector<8x128xf32>
    %19 = tpu.matmul %17, %18, %cst_14 {dimension_numbers = #tpu.dot_dimension_numbers<[1], [0], [0], [1], [0, 0, 1, 1], [], []>} : vector<8x256xbf16>, vector<256x128xbf16>, vector<8x128xf32> -> vector<8x128xf32>
    %c0_15 = arith.constant 0 : index
    %c0_16 = arith.constant 0 : index
    %20 = vector.load %arg7[%c0_15, %c0_16] : memref<8x128xf32, #tpu.memory_space<vmem>>, vector<8x128xf32>
    tpu.vector_store %arg7[%c0_15, %c0_16], %19 {strides = array<i32>} : memref<8x128xf32, #tpu.memory_space<vmem>>, vector<8x128xf32>,
    return
  }
  func.func @transform_0(%arg0: i32) -> (i32, i32) {
    %c0_i32 = arith.constant 0 : i32
    %c0_i32_0 = arith.constant 0 : i32
    return %arg0, %c0_i32 : i32, i32
  }
  func.func @transform_1(%arg0: i32) -> (i32, i32) {
    %c0_i32 = arith.constant 0 : i32
    %c0_i32_0 = arith.constant 0 : i32
    %c0_i32_1 = arith.constant 0 : i32
    return %c0_i32, %c0_i32_0 : i32, i32
  }
  func.func @transform_2(%arg0: i32) -> (i32, i32) {
    %c0_i32 = arith.constant 0 : i32
    %c0_i32_0 = arith.constant 0 : i32
    %c0_i32_1 = arith.constant 0 : i32
    return %c0_i32, %c0_i32_0 : i32, i32
  }
  func.func @transform_3(%arg0: i32) -> (i32, i32) {
    %c0_i32 = arith.constant 0 : i32
    %c0_i32_0 = arith.constant 0 : i32
    %c0_i32_1 = arith.constant 0 : i32
    return %c0_i32, %c0_i32_0 : i32, i32
  }
  func.func @transform_4(%arg0: i32) -> (i32, i32) {
    %c0_i32 = arith.constant 0 : i32
    %c0_i32_0 = arith.constant 0 : i32
    %c0_i32_1 = arith.constant 0 : i32
    return %c0_i32, %c0_i32_0 : i32, i32
  }
  func.func @transform_5(%arg0: i32) -> (i32, i32) {
    %c0_i32 = arith.constant 0 : i32
    %c0_i32_0 = arith.constant 0 : i32
    %c0_i32_1 = arith.constant 0 : i32
    return %c0_i32, %c0_i32_0 : i32, i32
  }
  func.func @transform_6(%arg0: i32) -> (i32, i32) {
    %c0_i32 = arith.constant 0 : i32
    %c0_i32_0 = arith.constant 0 : i32
    return %arg0, %c0_i32 : i32, i32
  }
}

</mosaic_0001>

<bundles_post_ra>
// kernel: encoder_forward_pallas.1
= control target key start
LH: loop header
LB: loop body
LE: loop exit
PB: predicated region body
PF: predicated region fallthrough
CT: control target
= control target key end

     0   :  { %11 = vsyncpa [#allocation3], 0  ;;  %s3809_s0 = inlined_call_operand.vmem [shape: f32[8,768], index: 0, kind: input, shape index: {}]   ;;  %s3810_s1 = inlined_call_operand.hbm [shape: bf16[768,512], index: 1, kind: input, shape index: {}]   ;;  %s3811_s2 = inlined_call_operand.vmem [shape: f32[1,512], index: 2, kind: input, shape index: {}]   ;;  %s3812_s3 = inlined_call_operand.hbm [shape: bf16[512,256], index: 3, kind: input, shape index: {}]   ;;  %s3813_s4 = inlined_call_operand.vmem [shape: f32[1,256], index: 4, kind: input, shape index: {}]   ;;  %s3814_s5 = inlined_call_operand.vmem [shape: bf16[256,128], index: 5, kind: input, shape index: {}]   ;;  %s3815_s6 = inlined_call_operand.vmem [shape: f32[8,128], index: 6, kind: output, shape index: {}]  }
   0x1   :  { %s19_s23 = sshll.u32 %s3810_s1, 4  ;;  %s20_s23 = int_to_ptr.hbm [resolvable:$true] %s19_s23 }
   0x2   :  { %12 = vsyncpa [#allocation5], 0  ;;  %s3626_s24 = smov [#allocation2]   ;;  %s34_s28 = sshll.u32 %s3812_s3, 4  ;;  %s35_s28 = int_to_ptr.hbm [resolvable:$true] %s34_s28 }
   0x3   :  { %s21_s25 = sshll.u32 %s3626_s24, 4  ;;  %s3627_s29 = smov 256   ;;  %s22_s25 = int_to_ptr.vmem [resolvable:$true] %s21_s25 }
   0x4   :  { %s3628_s30 = smov 16   ;;  %s3629_s7 = smov [#allocation4]  }
   0x5   :  { %27 = dma.hbm_to_vmem [thread:$0]  %s20_s23, 24576, %s22_s25, [#allocation3], %s3627_s29, %s3627_s29, %s3628_s30  }
   0x6   :  { %s36_s8 = sshll.u32 %s3629_s7, 4  ;;  %s3630_s9 = smov 128   ;;  %s37_s8 = int_to_ptr.vmem [resolvable:$true] %s36_s8 }
   0x7   :  { %s3631_s10 = smov 8  }
   0x8   :  { %42 = dma.hbm_to_vmem [thread:$0]  %s35_s28, 8192, %s37_s8, [#allocation5], %s3630_s9, %s3630_s9, %s3631_s10  }
   0x9   :  { %3622 = dma.done.wait [#allocation3], 24576  }
   0xa   :  { %3623 = vsyncadd [#allocation3], 4294942720 }
   0xb   :  { %3624 = dma.done.wait [#allocation5], 8192  }
   0xc   :  { %3625 = vsyncadd [#allocation5], 4294959104  ;;  %v2322_v0 = vld [vmem:[#allocation2 + $0xe0] sm:$0xf]  ;;  %v3326_v1 = vld [vmem:[#allocation2 + $0xec] sm:$0xf0] }
   0xd   :  { %v2450_v2 = vld [vmem:[#allocation2 + $0x1e0] sm:$0xf]  ;;  %v2323_v3 = vor.u32 %v3326_v1, %v2322_v0  ;;  %v3358_v4 = vld [vmem:[#allocation2 + $0x1ec] sm:$0xf0] }
   0xe   :  { %v2578_v5 = vld [vmem:[#allocation2 + $0x2e0] sm:$0xf]  ;;  %v3390_v6 = vld [vmem:[#allocation2 + $0x2ec] sm:$0xf0]  ;;  %v2451_v7 = vor.u32 %v3358_v4, %v2450_v2 }
   0xf   :  { %v2579_v8 = vor.u32 %v3390_v6, %v2578_v5  ;;  %v2706_v9 = vld [vmem:[#allocation2 + $0x3e0] sm:$0xf]  ;;  %v3422_v10 = vld [vmem:[#allocation2 + $0x3ec] sm:$0xf0]  ;;  %1229 = vmatpush.bf16.msra.mxu0 %v2323_v3 }
  0x10   :  { %v2306_v11 = vld [vmem:[#allocation2 + $0xc0] sm:$0xf]  ;;  %v2707_v12 = vor.u32 %v3422_v10, %v2706_v9  ;;  %v3322_v13 = vld [vmem:[#allocation2 + $0xcc] sm:$0xf0]  ;;  %1242 = vmatpush.bf16.msra.mxu1 %v2451_v7 }
  0x11   :  { %v2434_v14 = vld [vmem:[#allocation2 + $0x1c0] sm:$0xf]  ;;  %v3354_v15 = vld [vmem:[#allocation2 + $0x1cc] sm:$0xf0]  ;;  %1255 = vmatpush.bf16.msra.mxu2 %v2579_v8  ;;  %v2307_v16 = vor.u32 %v3322_v13, %v2306_v11 }
  0x12   :  { %v2435_v17 = vor.u32 %v3354_v15, %v2434_v14  ;;  %v2562_v18 = vld [vmem:[#allocation2 + $0x2c0] sm:$0xf]  ;;  %v3386_v19 = vld [vmem:[#allocation2 + $0x2cc] sm:$0xf0]  ;;  %1268 = vmatpush.bf16.msra.mxu3 %v2707_v12 }
  0x13   :  { %v2690_v20 = vld [vmem:[#allocation2 + $0x3c0] sm:$0xf]  ;;  %v2563_v21 = vor.u32 %v3386_v19, %v2562_v18  ;;  %v3418_v22 = vld [vmem:[#allocation2 + $0x3cc] sm:$0xf0]  ;;  %1230 = vmatpush.bf16.msra.mxu0 %v2307_v16 }
  0x14   :  { %v2290_v23 = vld [vmem:[#allocation2 + $0xa0] sm:$0xf]  ;;  %v3318_v24 = vld [vmem:[#allocation2 + $0xac] sm:$0xf0]  ;;  %v2691_v25 = vor.u32 %v3418_v22, %v2690_v20  ;;  %1243 = vmatpush.bf16.msra.mxu1 %v2435_v17 }
  0x15   :  { %v2418_v26 = vld [vmem:[#allocation2 + $0x1a0] sm:$0xf]  ;;  %v3350_v27 = vld [vmem:[#allocation2 + $0x1ac] sm:$0xf0]  ;;  %v2291_v29 = vor.u32 %v3318_v24, %v2290_v23  ;;  %1256 = vmatpush.bf16.msra.mxu2 %v2563_v21 }
  0x16   :  { %v2546_v28 = vld [vmem:[#allocation2 + $0x2a0] sm:$0xf]  ;;  %v3382_v30 = vld [vmem:[#allocation2 + $0x2ac] sm:$0xf0]  ;;  %v2419_v33 = vor.u32 %v3350_v27, %v2418_v26  ;;  %1269 = vmatpush.bf16.msra.mxu3 %v2691_v25 }
  0x17   :  { %v2674_v31 = vld [vmem:[#allocation2 + $0x3a0] sm:$0xf]  ;;  %v3414_v32 = vld [vmem:[#allocation2 + $0x3ac] sm:$0xf0]  ;;  %v2547_v34 = vor.u32 %v3382_v30, %v2546_v28  ;;  %1231 = vmatpush.bf16.msra.mxu0 %v2291_v29 }
  0x18   :  { %v2274_v35 = vld [vmem:[#allocation2 + $0x80] sm:$0xf]  ;;  %v3314_v36 = vld [vmem:[#allocation2 + $0x8c] sm:$0xf0]  ;;  %v2675_v38 = vor.u32 %v3414_v32, %v2674_v31  ;;  %1244 = vmatpush.bf16.msra.mxu1 %v2419_v33  ;;  %v3324_v33 = vld [vmem:[#allocation2 + $0xe4] sm:$0xf] }
  0x19   :  { %v2402_v37 = vld [vmem:[#allocation2 + $0x180] sm:$0xf]  ;;  %v3346_v39 = vld [vmem:[#allocation2 + $0x18c] sm:$0xf0]  ;;  %v2275_v44 = vor.u32 %v3314_v36, %v2274_v35  ;;  %1257 = vmatpush.bf16.msra.mxu2 %v2547_v34  ;;  %v2324_v34 = vld [vmem:[#allocation2 + $0xf0] sm:$0xf0] }
  0x1a   :  { %v2530_v40 = vld [vmem:[#allocation2 + $0x280] sm:$0xf]  ;;  %v3378_v41 = vld [vmem:[#allocation2 + $0x28c] sm:$0xf0]  ;;  %v2403_v45 = vor.u32 %v3346_v39, %v2402_v37  ;;  %1270 = vmatpush.bf16.msra.mxu3 %v2675_v38  ;;  %v3356_v37 = vld [vmem:[#allocation2 + $0x1e4] sm:$0xf] }
  0x1b   :  { %v2658_v42 = vld [vmem:[#allocation2 + $0x380] sm:$0xf]  ;;  %v3410_v43 = vld [vmem:[#allocation2 + $0x38c] sm:$0xf0]  ;;  %v2531_v46 = vor.u32 %v3378_v41, %v2530_v40  ;;  %1232 = vmatpush.bf16.msra.mxu0 %v2275_v44  ;;  %v2452_v38 = vld [vmem:[#allocation2 + $0x1f0] sm:$0xf0] }
  0x1c   :  { %v2258_v47 = vld [vmem:[#allocation2 + $0x60] sm:$0xf]  ;;  %v3310_v48 = vld [vmem:[#allocation2 + $0x6c] sm:$0xf0]  ;;  %v2659_v50 = vor.u32 %v3410_v43, %v2658_v42  ;;  %1245 = vmatpush.bf16.msra.mxu1 %v2403_v45  ;;  %v2327_v42 = vor.u32 %v3324_v33, %v2324_v34 }
  0x1d   :  { %v2386_v49 = vld [vmem:[#allocation2 + $0x160] sm:$0xf]  ;;  %v3342_v51 = vld [vmem:[#allocation2 + $0x16c] sm:$0xf0]  ;;  %v2259_v56 = vor.u32 %v3310_v48, %v2258_v47  ;;  %1258 = vmatpush.bf16.msra.mxu2 %v2531_v46  ;;  %v2455_v46 = vor.u32 %v3356_v37, %v2452_v38  ;;  %v3320_v48 = vld [vmem:[#allocation2 + $0xc4] sm:$0xf] }
  0x1e   :  { %v2514_v52 = vld [vmem:[#allocation2 + $0x260] sm:$0xf]  ;;  %v3374_v53 = vld [vmem:[#allocation2 + $0x26c] sm:$0xf0]  ;;  %v2387_v57 = vor.u32 %v3342_v51, %v2386_v49  ;;  %1271 = vmatpush.bf16.msra.mxu3 %v2659_v50  ;;  %v2308_v49 = vld [vmem:[#allocation2 + $0xd0] sm:$0xf0] }
  0x1f   :  { %v2642_v54 = vld [vmem:[#allocation2 + $0x360] sm:$0xf]  ;;  %v3406_v55 = vld [vmem:[#allocation2 + $0x36c] sm:$0xf0]  ;;  %v2515_v58 = vor.u32 %v3374_v53, %v2514_v52  ;;  %1233 = vmatpush.bf16.msra.mxu0 %v2259_v56  ;;  %v3352_v50 = vld [vmem:[#allocation2 + $0x1c4] sm:$0xf] }
  0x20   :  { %v2242_v59 = vld [vmem:[#allocation2 + $0x40] sm:$0xf]  ;;  %v3306_v60 = vld [vmem:[#allocation2 + $0x4c] sm:$0xf0]  ;;  %v2643_v62 = vor.u32 %v3406_v55, %v2642_v54  ;;  %1246 = vmatpush.bf16.msra.mxu1 %v2387_v57  ;;  %v2436_v51 = vld [vmem:[#allocation2 + $0x1d0] sm:$0xf0]  ;;  %v2311_v55 = vor.u32 %v3320_v48, %v2308_v49 }
  0x21   :  { %v2370_v61 = vld [vmem:[#allocation2 + $0x140] sm:$0xf]  ;;  %v3338_v63 = vld [vmem:[#allocation2 + $0x14c] sm:$0xf0]  ;;  %v2243_v4 = vor.u32 %v3306_v60, %v2242_v59  ;;  %1259 = vmatpush.bf16.msra.mxu2 %v2515_v58  ;;  %v2439_v59 = vor.u32 %v3352_v50, %v2436_v51  ;;  %v3316_v60 = vld [vmem:[#allocation2 + $0xa4] sm:$0xf] }
  0x22   :  { %v2498_v0 = vld [vmem:[#allocation2 + $0x240] sm:$0xf]  ;;  %v3370_v1 = vld [vmem:[#allocation2 + $0x24c] sm:$0xf0]  ;;  %v2371_v5 = vor.u32 %v3338_v63, %v2370_v61  ;;  %1272 = vmatpush.bf16.msra.mxu3 %v2643_v62  ;;  %v2292_v61 = vld [vmem:[#allocation2 + $0xb0] sm:$0xf0] }
  0x23   :  { %v2626_v2 = vld [vmem:[#allocation2 + $0x340] sm:$0xf]  ;;  %v3402_v3 = vld [vmem:[#allocation2 + $0x34c] sm:$0xf0]  ;;  %v2499_v6 = vor.u32 %v3370_v1, %v2498_v0  ;;  %1234 = vmatpush.bf16.msra.mxu0 %v2243_v4  ;;  %v3348_v62 = vld [vmem:[#allocation2 + $0x1a4] sm:$0xf] }
  0x24   :  { %v2226_v7 = vld [vmem:[#allocation2 + $0x20] sm:$0xf]  ;;  %v3302_v8 = vld [vmem:[#allocation2 + $0x2c] sm:$0xf0]  ;;  %v2627_v10 = vor.u32 %v3402_v3, %v2626_v2  ;;  %1247 = vmatpush.bf16.msra.mxu1 %v2371_v5  ;;  %v2420_v63 = vld [vmem:[#allocation2 + $0x1b0] sm:$0xf0]  ;;  %v2295_v5 = vor.u32 %v3316_v60, %v2292_v61 }
  0x25   :  { %v2354_v9 = vld [vmem:[#allocation2 + $0x120] sm:$0xf]  ;;  %v3334_v11 = vld [vmem:[#allocation2 + $0x12c] sm:$0xf0]  ;;  %v2227_v16 = vor.u32 %v3302_v8, %v2226_v7  ;;  %1260 = vmatpush.bf16.msra.mxu2 %v2499_v6 }
  0x26   :  { %v2482_v12 = vld [vmem:[#allocation2 + $0x220] sm:$0xf]  ;;  %v3366_v13 = vld [vmem:[#allocation2 + $0x22c] sm:$0xf0]  ;;  %v2355_v19 = vor.u32 %v3334_v11, %v2354_v9  ;;  %1273 = vmatpush.bf16.msra.mxu3 %v2627_v10  ;;  %v58_v10 = vld [vmem:[%s3809_s0 + $0x18] sm:$0xff]  ;;  %v2423_v11 = vor.u32 %v3348_v62, %v2420_v63 }
  0x27   :  { %v2610_v14 = vld [vmem:[#allocation2 + $0x320] sm:$0xf]  ;;  %v3398_v15 = vld [vmem:[#allocation2 + $0x32c] sm:$0xf0]  ;;  %v2483_v20 = vor.u32 %v3366_v13, %v2482_v12  ;;  %1235 = vmatpush.bf16.msra.mxu0 %v2227_v16  ;;  %v3312_v13 = vld [vmem:[#allocation2 + $0x84] sm:$0xf] }
  0x28   :  { %v2210_v17 = vld [vmem:[#allocation2] sm:$0xf]  ;;  %v3298_v18 = vld [vmem:[#allocation2 + $0xc] sm:$0xf0]  ;;  %v2611_v24 = vor.u32 %v3398_v15, %v2610_v14  ;;  %1248 = vmatpush.bf16.msra.mxu1 %v2355_v19  ;;  %v2276_v14 = vld [vmem:[#allocation2 + $0x90] sm:$0xf0]  ;;  %v3686_v15 = vpack.c.bf16 %v58_v10, %v58_v10 }
  0x29   :  { %v2338_v21 = vld [vmem:[#allocation2 + $0x100] sm:$0xf]  ;;  %v3330_v22 = vld [vmem:[#allocation2 + $0x10c] sm:$0xf0]  ;;  %v2211_v31 = vor.u32 %v3298_v18, %v2210_v17  ;;  %1261 = vmatpush.bf16.msra.mxu2 %v2483_v20  ;;  %v3344_v16 = vld [vmem:[#allocation2 + $0x184] sm:$0xf] }
  0x2a   :  { %v2466_v23 = vld [vmem:[#allocation2 + $0x200] sm:$0xf]  ;;  %v3362_v25 = vld [vmem:[#allocation2 + $0x20c] sm:$0xf0]  ;;  %v2339_v35 = vor.u32 %v3330_v22, %v2338_v21  ;;  %1274 = vmatpush.bf16.msra.mxu3 %v2611_v24  ;;  %v2404_v17 = vld [vmem:[#allocation2 + $0x190] sm:$0xf0]  ;;  %v2279_v21 = vor.u32 %v3312_v13, %v2276_v14 }
  0x2b   :  { %v2594_v26 = vld [vmem:[#allocation2 + $0x300] sm:$0xf]  ;;  %v3394_v27 = vld [vmem:[#allocation2 + $0x30c] sm:$0xf0]  ;;  %v2467_v36 = vor.u32 %v3362_v25, %v2466_v23  ;;  %1236 = vmatpush.bf16.msra.mxu0 %v2211_v31  ;;  %v56_v19 = vld [vmem:[%s3809_s0 + $0x8] sm:$0xff] }
  0x2c   :  { %v2834_v28 = vld [vmem:[#allocation2 + $0x4e0] sm:$0xf]  ;;  %v3454_v29 = vld [vmem:[#allocation2 + $0x4ec] sm:$0xf0]  ;;  %v2595_v39 = vor.u32 %v3394_v27, %v2594_v26  ;;  %1249 = vmatpush.bf16.msra.mxu1 %v2339_v35  ;;  %v3694_v25 = vpack.c.bf16 %v56_v19, %v56_v19  ;;  %v2407_v26 = vor.u32 %v3344_v16, %v2404_v17  ;;  %v2388_v31 = vld [vmem:[#allocation2 + $0x170] sm:$0xf0] }
  0x2d   :  { %v2962_v30 = vld [vmem:[#allocation2 + $0x5e0] sm:$0xf]  ;;  %v3486_v32 = vld [vmem:[#allocation2 + $0x5ec] sm:$0xf0]  ;;  %v2835_v40 = vor.u32 %v3454_v29, %v2834_v28  ;;  %1262 = vmatpush.bf16.msra.mxu2 %v2467_v36  ;;  %v3308_v28 = vld [vmem:[#allocation2 + $0x64] sm:$0xf] }
  0x2e   :  { %v2963_v41 = vor.u32 %v3486_v32, %v2962_v30  ;;  %v2818_v43 = vld [vmem:[#allocation2 + $0x4c0] sm:$0xf]  ;;  %v3450_v44 = vld [vmem:[#allocation2 + $0x4cc] sm:$0xf0]  ;;  %1275 = vmatpush.bf16.msra.mxu3 %v2595_v39  ;;  %v2260_v29 = vld [vmem:[#allocation2 + $0x70] sm:$0xf0] }
  0x2f   :  { %v2946_v45 = vld [vmem:[#allocation2 + $0x5c0] sm:$0xf]  ;;  %v3482_v47 = vld [vmem:[#allocation2 + $0x5cc] sm:$0xf0]  ;;  %1281 = vmatpush.bf16.msrb.mxu0 %v2835_v40  ;;  %v2819_v52 = vor.u32 %v3450_v44, %v2818_v43  ;;  %v3340_v30 = vld [vmem:[#allocation2 + $0x164] sm:$0xf]  ;;  %1250 = vmatmul.bf16.vlgmr.msra.gmra.mxu1 %v3694_v25  ;;  %v2263_v34 = vor.u32 %v3308_v28, %v2260_v29 }
  0x30   :  { %v2802_v53 = vld [vmem:[#allocation2 + $0x4a0] sm:$0xf]  ;;  %1294 = vmatpush.bf16.msrb.mxu1 %v2963_v41  ;;  %v2947_v54 = vor.u32 %v3482_v47, %v2946_v45  ;;  %v3446_v56 = vld [vmem:[#allocation2 + $0x4ac] sm:$0xf0]  ;;  %v2391_v38 = vor.u32 %v3340_v30, %v2388_v31  ;;  %v3304_v40 = vld [vmem:[#allocation2 + $0x44] sm:$0xf] }
  0x31   :  { %1307 = vmatpush.bf16.msrb.mxu2 %v2327_v42  ;;  %v2930_v57 = vld [vmem:[#allocation2 + $0x5a0] sm:$0xf]  ;;  %v3478_v58 = vld [vmem:[#allocation2 + $0x5ac] sm:$0xf0]  ;;  %v2803_v0 = vor.u32 %v3446_v56, %v2802_v53  ;;  %1276 = vmatmul.bf16.vlgmr.msra.gmra.mxu3 %v3686_v15  ;;  %v2244_v41 = vld [vmem:[#allocation2 + $0x50] sm:$0xf0] }
  0x32   :  { %1320 = vmatpush.bf16.msrb.mxu3 %v2455_v46  ;;  %v2931_v1 = vor.u32 %v3478_v58, %v2930_v57  ;;  %v2786_v2 = vld [vmem:[#allocation2 + $0x480] sm:$0xf]  ;;  %v57_v3 = vld [vmem:[%s3809_s0 + $0x10] sm:$0xff]  ;;  %v3336_v42 = vld [vmem:[#allocation2 + $0x144] sm:$0xf]  ;;  %v2247_v46 = vor.u32 %v3304_v40, %v2244_v41 }
  0x33   :  { %1282 = vmatpush.bf16.msrb.mxu0 %v2819_v52  ;;  %v55_v4 = vld [vmem:[%s3809_s0] sm:$0xff]  ;;  %v3442_v6 = vld [vmem:[#allocation2 + $0x48c] sm:$0xf0]  ;;  %v3679_v8 = vpack.c.bf16 %v57_v3, %v57_v3  ;;  %v2372_v43 = vld [vmem:[#allocation2 + $0x150] sm:$0xf0] }
  0x34   :  { %1295 = vmatpush.bf16.msrb.mxu1 %v2947_v54  ;;  %v2914_v7 = vld [vmem:[#allocation2 + $0x580] sm:$0xf]  ;;  %v3681_v9 = vpack.c.bf16 %v55_v4, %v55_v4  ;;  %v3474_v12 = vld [vmem:[#allocation2 + $0x58c] sm:$0xf0]  ;;  %v2787_v18 = vor.u32 %v3442_v6, %v2786_v2  ;;  %v2375_v50 = vor.u32 %v3336_v42, %v2372_v43  ;;  %v3300_v52 = vld [vmem:[#allocation2 + $0x24] sm:$0xf] }
  0x35   :  { %1308 = vmatpush.bf16.msrb.mxu2 %v2311_v55  ;;  %v2915_v20 = vor.u32 %v3474_v12, %v2914_v7  ;;  %v2770_v22 = vld [vmem:[#allocation2 + $0x460] sm:$0xf]  ;;  %v3438_v23 = vld [vmem:[#allocation2 + $0x46c] sm:$0xf0]  ;;  %v2228_v53 = vld [vmem:[#allocation2 + $0x30] sm:$0xf0] }
  0x36   :  { %1321 = vmatpush.bf16.msrb.mxu3 %v2439_v59  ;;  %1263 = vmatmul.bf16.vlgmr.msra.gmra.mxu2 %v3679_v8  ;;  %v2898_v24 = vld [vmem:[#allocation2 + $0x560] sm:$0xf]  ;;  %v3470_v27 = vld [vmem:[#allocation2 + $0x56c] sm:$0xf0]  ;;  %v2771_v32 = vor.u32 %v3438_v23, %v2770_v22  ;;  %v3332_v54 = vld [vmem:[#allocation2 + $0x124] sm:$0xf]  ;;  %v2231_v60 = vor.u32 %v3300_v52, %v2228_v53 }
  0x37   :  { %1237 = vmatmul.bf16.vlgmr.msra.gmra.mxu0 %v3681_v9  ;;  %v2899_v33 = vor.u32 %v3470_v27, %v2898_v24  ;;  %v2754_v35 = vld [vmem:[#allocation2 + $0x440] sm:$0xf]  ;;  %v3434_v36 = vld [vmem:[#allocation2 + $0x44c] sm:$0xf0]  ;;  %v2356_v55 = vld [vmem:[#allocation2 + $0x130] sm:$0xf0] }
  0x38   :  { %1283 = vmatpush.bf16.msrb.mxu0 %v2803_v0  ;;  %1296 = vmatpush.bf16.msrb.mxu1 %v2931_v1  ;;  %v2882_v37 = vld [vmem:[#allocation2 + $0x540] sm:$0xf]  ;;  %v3466_v39 = vld [vmem:[#allocation2 + $0x54c] sm:$0xf0]  ;;  %v2755_v44 = vor.u32 %v3434_v36, %v2754_v35  ;;  %v3296_v63 = vld [vmem:[#allocation2 + $0x4] sm:$0xf]  ;;  %v2359_v0 = vor.u32 %v3332_v54, %v2356_v55 }
  0x39   :  { %1309 = vmatpush.bf16.msrb.mxu2 %v2295_v5  ;;  %v2883_v45 = vor.u32 %v3466_v39, %v2882_v37  ;;  %v2738_v47 = vld [vmem:[#allocation2 + $0x420] sm:$0xf]  ;;  %v3430_v48 = vld [vmem:[#allocation2 + $0x42c] sm:$0xf0]  ;;  %v2212_v1 = vld [vmem:[#allocation2 + $0x10] sm:$0xf0] }
  0x3a   :  { %1322 = vmatpush.bf16.msrb.mxu3 %v2423_v11  ;;  %v2866_v49 = vld [vmem:[#allocation2 + $0x520] sm:$0xf]  ;;  %v3462_v51 = vld [vmem:[#allocation2 + $0x52c] sm:$0xf0]  ;;  %v2739_v56 = vor.u32 %v3430_v48, %v2738_v47  ;;  %v3328_v2 = vld [vmem:[#allocation2 + $0x104] sm:$0xf]  ;;  %v2215_v14 = vor.u32 %v3296_v63, %v2212_v1 }
  0x3b   :  { %v2722_v57 = vld [vmem:[#allocation2 + $0x400] sm:$0xf]  ;;  %v3426_v58 = vld [vmem:[#allocation2 + $0x40c] sm:$0xf0]  ;;  %v2867_v59 = vor.u32 %v3462_v51, %v2866_v49  ;;  %v2340_v3 = vld [vmem:[#allocation2 + $0x110] sm:$0xf0] }
  0x3c   :  { %1284 = vmatpush.bf16.msrb.mxu0 %v2787_v18  ;;  %1297 = vmatpush.bf16.msrb.mxu1 %v2915_v20  ;;  %v2850_v61 = vld [vmem:[#allocation2 + $0x500] sm:$0xf]  ;;  %v3458_v62 = vld [vmem:[#allocation2 + $0x50c] sm:$0xf0]  ;;  %v3388_v4 = vld [vmem:[#allocation2 + $0x2e4] sm:$0xf]  ;;  %v2723_v7 = vor.u32 %v3426_v58, %v2722_v57  ;;  %v2343_v19 = vor.u32 %v3328_v2, %v2340_v3 }
  0x3d   :  { %1310 = vmatpush.bf16.msrb.mxu2 %v2279_v21  ;;  %v2580_v5 = vld [vmem:[#allocation2 + $0x2f0] sm:$0xf0]  ;;  %v3420_v6 = vld [vmem:[#allocation2 + $0x3e4] sm:$0xf]  ;;  %v2851_v13 = vor.u32 %v3458_v62, %v2850_v61  ;;  %v60_v21 = vld [vmem:[%s3809_s0 + $0x28] sm:$0xff] }
  0x3e   :  { %1323 = vmatpush.bf16.msrb.mxu3 %v2407_v26  ;;  %v2708_v10 = vld [vmem:[#allocation2 + $0x3f0] sm:$0xf0]  ;;  %v3452_v11 = vld [vmem:[#allocation2 + $0x4e4] sm:$0xf]  ;;  %v2583_v20 = vor.u32 %v3388_v4, %v2580_v5  ;;  %v3705_v35 = vpack.c.bf16 %v60_v21, %v60_v21 }
  0x3f   :  { %v2836_v12 = vld [vmem:[#allocation2 + $0x4f0] sm:$0xf0]  ;;  %v3484_v16 = vld [vmem:[#allocation2 + $0x5e4] sm:$0xf]  ;;  %v2711_v22 = vor.u32 %v3420_v6, %v2708_v10 }
  0x40   :  { %1285 = vmatpush.bf16.msrb.mxu0 %v2771_v32  ;;  %1298 = vmatpush.bf16.msrb.mxu1 %v2899_v33  ;;  %v2964_v17 = vld [vmem:[#allocation2 + $0x5f0] sm:$0xf0]  ;;  %v59_v18 = vld [vmem:[%s3809_s0 + $0x20] sm:$0xff]  ;;  %v2839_v23 = vor.u32 %v3452_v11, %v2836_v12 }
  0x41   :  { %1311 = vmatpush.bf16.msrb.mxu2 %v2263_v34  ;;  %v3384_v24 = vld [vmem:[#allocation2 + $0x2c4] sm:$0xf]  ;;  %v2564_v26 = vld [vmem:[#allocation2 + $0x2d0] sm:$0xf0]  ;;  %v2967_v28 = vor.u32 %v3484_v16, %v2964_v17  ;;  %v3703_v32 = vpack.c.bf16 %v59_v18, %v59_v18 }
  0x42   :  { %1324 = vmatpush.bf16.msrb.mxu3 %v2391_v38  ;;  %v3416_v27 = vld [vmem:[#allocation2 + $0x3c4] sm:$0xf]  ;;  %v2692_v29 = vld [vmem:[#allocation2 + $0x3d0] sm:$0xf0]  ;;  %v2567_v36 = vor.u32 %v3384_v24, %v2564_v26 }
  0x43   :  { %v3448_v30 = vld [vmem:[#allocation2 + $0x4c4] sm:$0xf]  ;;  %v2820_v31 = vld [vmem:[#allocation2 + $0x4d0] sm:$0xf0]  ;;  %v2695_v37 = vor.u32 %v3416_v27, %v2692_v29 }
  0x44   :  { %1286 = vmatpush.bf16.msrb.mxu0 %v2755_v44  ;;  %1299 = vmatpush.bf16.msrb.mxu1 %v2883_v45  ;;  %v3480_v33 = vld [vmem:[#allocation2 + $0x5c4] sm:$0xf]  ;;  %v2948_v34 = vld [vmem:[#allocation2 + $0x5d0] sm:$0xf0]  ;;  %v2823_v38 = vor.u32 %v3448_v30, %v2820_v31 }
  0x45   :  { %1312 = vmatpush.bf16.msrb.mxu2 %v2247_v46  ;;  %v3380_v39 = vld [vmem:[#allocation2 + $0x2a4] sm:$0xf]  ;;  %v2548_v40 = vld [vmem:[#allocation2 + $0x2b0] sm:$0xf0]  ;;  %v2951_v42 = vor.u32 %v3480_v33, %v2948_v34 }
  0x46   :  { %1325 = vmatpush.bf16.msrb.mxu3 %v2375_v50  ;;  %v3412_v41 = vld [vmem:[#allocation2 + $0x3a4] sm:$0xf]  ;;  %v2676_v43 = vld [vmem:[#allocation2 + $0x3b0] sm:$0xf0]  ;;  %v2551_v48 = vor.u32 %v3380_v39, %v2548_v40 }
  0x47   :  { %v3444_v44 = vld [vmem:[#allocation2 + $0x4a4] sm:$0xf]  ;;  %v2804_v45 = vld [vmem:[#allocation2 + $0x4b0] sm:$0xf0]  ;;  %v2679_v49 = vor.u32 %v3412_v41, %v2676_v43 }
  0x48   :  { %1287 = vmatpush.bf16.msrb.mxu0 %v2739_v56  ;;  %1300 = vmatpush.bf16.msrb.mxu1 %v2867_v59  ;;  %v3476_v46 = vld [vmem:[#allocation2 + $0x5a4] sm:$0xf]  ;;  %v2932_v47 = vld [vmem:[#allocation2 + $0x5b0] sm:$0xf0]  ;;  %v2807_v50 = vor.u32 %v3444_v44, %v2804_v45 }
  0x49   :  { %1313 = vmatpush.bf16.msrb.mxu2 %v2231_v60  ;;  %v3376_v51 = vld [vmem:[#allocation2 + $0x284] sm:$0xf]  ;;  %v2532_v52 = vld [vmem:[#allocation2 + $0x290] sm:$0xf0]  ;;  %v2935_v54 = vor.u32 %v3476_v46, %v2932_v47 }
  0x4a   :  { %1326 = vmatpush.bf16.msrb.mxu3 %v2359_v0  ;;  %v3408_v53 = vld [vmem:[#allocation2 + $0x384] sm:$0xf]  ;;  %v2660_v55 = vld [vmem:[#allocation2 + $0x390] sm:$0xf0]  ;;  %v2535_v60 = vor.u32 %v3376_v51, %v2532_v52  ;;  %v3327_v51 = vld [vmem:[#allocation2 + $0xf4] sm:$0xf0] }
  0x4b   :  { %v3440_v56 = vld [vmem:[#allocation2 + $0x484] sm:$0xf]  ;;  %v2788_v57 = vld [vmem:[#allocation2 + $0x490] sm:$0xf0]  ;;  %v2663_v61 = vor.u32 %v3408_v53, %v2660_v55  ;;  %v2458_v52 = vld [vmem:[#allocation2 + $0x1e8] sm:$0xf] }
  0x4c   :  { %1288 = vmatpush.bf16.msrb.mxu0 %v2723_v7  ;;  %1301 = vmatpush.bf16.msrb.mxu1 %v2851_v13  ;;  %v3472_v58 = vld [vmem:[#allocation2 + $0x584] sm:$0xf]  ;;  %v2916_v59 = vld [vmem:[#allocation2 + $0x590] sm:$0xf0]  ;;  %v2791_v62 = vor.u32 %v3440_v56, %v2788_v57  ;;  %v2586_v55 = vld [vmem:[#allocation2 + $0x2e8] sm:$0xf] }
  0x4d   :  { %1314 = vmatpush.bf16.msrb.mxu2 %v2215_v14  ;;  %v3372_v63 = vld [vmem:[#allocation2 + $0x264] sm:$0xf]  ;;  %v2516_v0 = vld [vmem:[#allocation2 + $0x270] sm:$0xf0]  ;;  %v2919_v2 = vor.u32 %v3472_v58, %v2916_v59  ;;  %v3391_v56 = vld [vmem:[#allocation2 + $0x2f4] sm:$0xf0] }
  0x4e   :  { %1327 = vmatpush.bf16.msrb.mxu3 %v2343_v19  ;;  %v3404_v1 = vld [vmem:[#allocation2 + $0x364] sm:$0xf]  ;;  %v2644_v3 = vld [vmem:[#allocation2 + $0x370] sm:$0xf0]  ;;  %v2519_v10 = vor.u32 %v3372_v63, %v2516_v0  ;;  %v2714_v59 = vld [vmem:[#allocation2 + $0x3e8] sm:$0xf]  ;;  %v2587_v0 = vor.u32 %v3391_v56, %v2586_v55 }
  0x4f   :  { %1289 = vmatmul.bf16.vlgmr.msrb.gmra.mxu0 %v3703_v32  ;;  %1302 = vmatmul.bf16.vlgmr.msrb.gmra.mxu1 %v3705_v35  ;;  %v3436_v4 = vld [vmem:[#allocation2 + $0x464] sm:$0xf]  ;;  %v2772_v5 = vld [vmem:[#allocation2 + $0x470] sm:$0xf0]  ;;  %v2647_v11 = vor.u32 %v3404_v1, %v2644_v3  ;;  %v2314_v1 = vld [vmem:[#allocation2 + $0xc8] sm:$0xf] }
  0x50   :  { %1333 = vmatpush.bf16.msra.mxu0 %v2583_v20  ;;  %1346 = vmatpush.bf16.msra.mxu1 %v2711_v22  ;;  %v3468_v6 = vld [vmem:[#allocation2 + $0x564] sm:$0xf]  ;;  %v2900_v7 = vld [vmem:[#allocation2 + $0x570] sm:$0xf0]  ;;  %v2775_v12 = vor.u32 %v3436_v4, %v2772_v5  ;;  %v2442_v3 = vld [vmem:[#allocation2 + $0x1c8] sm:$0xf] }
  0x51   :  { %1359 = vmatpush.bf16.msra.mxu2 %v2839_v23  ;;  %1328 = vmatmul.bf16.vlgmr.msrb.gmra.mxu3 %v3694_v25  ;;  %v3368_v13 = vld [vmem:[#allocation2 + $0x244] sm:$0xf]  ;;  %v2500_v14 = vld [vmem:[#allocation2 + $0x250] sm:$0xf0]  ;;  %v2903_v17 = vor.u32 %v3468_v6, %v2900_v7  ;;  %v3355_v5 = vld [vmem:[#allocation2 + $0x1d4] sm:$0xf0] }
  0x52   :  { %1372 = vmatpush.bf16.msra.mxu3 %v2967_v28  ;;  %1315 = vmatmul.bf16.vlgmr.msrb.gmra.mxu2 %v3681_v9  ;;  %v3400_v16 = vld [vmem:[#allocation2 + $0x344] sm:$0xf]  ;;  %v2628_v18 = vld [vmem:[#allocation2 + $0x350] sm:$0xf0]  ;;  %v2503_v23 = vor.u32 %v3368_v13, %v2500_v14  ;;  %v2570_v6 = vld [vmem:[#allocation2 + $0x2c8] sm:$0xf]  ;;  %v2443_v13 = vor.u32 %v3355_v5, %v2442_v3 }
  0x53   :  { %v3432_v19 = vld [vmem:[#allocation2 + $0x444] sm:$0xf]  ;;  %v2756_v20 = vld [vmem:[#allocation2 + $0x450] sm:$0xf0]  ;;  %v2631_v24 = vor.u32 %v3400_v16, %v2628_v18  ;;  %v3387_v7 = vld [vmem:[#allocation2 + $0x2d4] sm:$0xf0] }
  0x54   :  { %1334 = vmatpush.bf16.msra.mxu0 %v2567_v36  ;;  %1347 = vmatpush.bf16.msra.mxu1 %v2695_v37  ;;  %v3464_v21 = vld [vmem:[#allocation2 + $0x544] sm:$0xf]  ;;  %v2884_v22 = vld [vmem:[#allocation2 + $0x550] sm:$0xf0]  ;;  %v2759_v26 = vor.u32 %v3432_v19, %v2756_v20  ;;  %v2571_v14 = vor.u32 %v3387_v7, %v2570_v6  ;;  %v2298_v16 = vld [vmem:[#allocation2 + $0xa8] sm:$0xf] }
  0x55   :  { %1360 = vmatpush.bf16.msra.mxu2 %v2823_v38  ;;  %v3364_v27 = vld [vmem:[#allocation2 + $0x224] sm:$0xf]  ;;  %v2484_v28 = vld [vmem:[#allocation2 + $0x230] sm:$0xf0]  ;;  %v2887_v30 = vor.u32 %v3464_v21, %v2884_v22  ;;  %v2426_v18 = vld [vmem:[#allocation2 + $0x1a8] sm:$0xf] }
  0x56   :  { %1373 = vmatpush.bf16.msra.mxu3 %v2951_v42  ;;  %v3396_v29 = vld [vmem:[#allocation2 + $0x324] sm:$0xf]  ;;  %v2612_v31 = vld [vmem:[#allocation2 + $0x330] sm:$0xf0]  ;;  %v2487_v38 = vor.u32 %v3364_v27, %v2484_v28  ;;  %v3351_v20 = vld [vmem:[#allocation2 + $0x1b4] sm:$0xf0] }
  0x57   :  { %v3428_v33 = vld [vmem:[#allocation2 + $0x424] sm:$0xf]  ;;  %v2740_v34 = vld [vmem:[#allocation2 + $0x430] sm:$0xf0]  ;;  %v2615_v41 = vor.u32 %v3396_v29, %v2612_v31  ;;  %v2554_v21 = vld [vmem:[#allocation2 + $0x2a8] sm:$0xf]  ;;  %v2427_v27 = vor.u32 %v3351_v20, %v2426_v18 }
  0x58   :  { %1335 = vmatpush.bf16.msra.mxu0 %v2551_v48  ;;  %1348 = vmatpush.bf16.msra.mxu1 %v2679_v49  ;;  %v3460_v36 = vld [vmem:[#allocation2 + $0x524] sm:$0xf]  ;;  %v2868_v37 = vld [vmem:[#allocation2 + $0x530] sm:$0xf0]  ;;  %v2743_v42 = vor.u32 %v3428_v33, %v2740_v34  ;;  %v3383_v22 = vld [vmem:[#allocation2 + $0x2b4] sm:$0xf0] }
  0x59   :  { %1361 = vmatpush.bf16.msra.mxu2 %v2807_v50  ;;  %v3360_v39 = vld [vmem:[#allocation2 + $0x204] sm:$0xf]  ;;  %v2468_v40 = vld [vmem:[#allocation2 + $0x210] sm:$0xf0]  ;;  %v2871_v46 = vor.u32 %v3460_v36, %v2868_v37  ;;  %v2330_v50 = vld [vmem:[#allocation2 + $0xe8] sm:$0xf]  ;;  %v2555_v28 = vor.u32 %v3383_v22, %v2554_v21 }
  0x5a   :  { %1374 = vmatpush.bf16.msra.mxu3 %v2935_v54  ;;  %v3392_v43 = vld [vmem:[#allocation2 + $0x304] sm:$0xf]  ;;  %v2596_v44 = vld [vmem:[#allocation2 + $0x310] sm:$0xf0]  ;;  %v2471_v53 = vor.u32 %v3360_v39, %v2468_v40  ;;  %v3359_v54 = vld [vmem:[#allocation2 + $0x1f4] sm:$0xf0] }
  0x5b   :  { %v3424_v45 = vld [vmem:[#allocation2 + $0x404] sm:$0xf]  ;;  %v2724_v47 = vld [vmem:[#allocation2 + $0x410] sm:$0xf0]  ;;  %v2599_v57 = vor.u32 %v3392_v43, %v2596_v44  ;;  %v2459_v63 = vor.u32 %v3359_v54, %v2458_v52  ;;  %v2282_v29 = vld [vmem:[#allocation2 + $0x88] sm:$0xf] }
  0x5c   :  { %1336 = vmatpush.bf16.msra.mxu0 %v2535_v60  ;;  %1349 = vmatpush.bf16.msra.mxu1 %v2663_v61  ;;  %v3456_v48 = vld [vmem:[#allocation2 + $0x504] sm:$0xf]  ;;  %v2852_v49 = vld [vmem:[#allocation2 + $0x510] sm:$0xf0]  ;;  %v2727_v58 = vor.u32 %v3424_v45, %v2724_v47  ;;  %v3423_v60 = vld [vmem:[#allocation2 + $0x3f4] sm:$0xf0] }
  0x5d   :  { %1362 = vmatpush.bf16.msra.mxu2 %v2791_v62  ;;  %v2855_v61 = vor.u32 %v3456_v48, %v2852_v49  ;;  %v2331_v62 = vor.u32 %v3327_v51, %v2330_v50  ;;  %v2715_v4 = vor.u32 %v3423_v60, %v2714_v59  ;;  %v2410_v31 = vld [vmem:[#allocation2 + $0x188] sm:$0xf]  ;;  %v3347_v34 = vld [vmem:[#allocation2 + $0x194] sm:$0xf0] }
  0x5e   :  { %1375 = vmatpush.bf16.msra.mxu3 %v2919_v2  ;;  %v3323_v2 = vld [vmem:[#allocation2 + $0xd4] sm:$0xf0]  ;;  %v2538_v36 = vld [vmem:[#allocation2 + $0x288] sm:$0xf] }
  0x5f   :  { %v3379_v37 = vld [vmem:[#allocation2 + $0x294] sm:$0xf0]  ;;  %v2266_v43 = vld [vmem:[#allocation2 + $0x68] sm:$0xf] }
  0x60   :  { %1337 = vmatpush.bf16.msra.mxu0 %v2519_v10  ;;  %1350 = vmatpush.bf16.msra.mxu1 %v2647_v11  ;;  %v2698_v10 = vld [vmem:[#allocation2 + $0x3c8] sm:$0xf]  ;;  %v3419_v11 = vld [vmem:[#allocation2 + $0x3d4] sm:$0xf0] }
  0x61   :  { %1363 = vmatpush.bf16.msra.mxu2 %v2775_v12  ;;  %v2315_v12 = vor.u32 %v3323_v2, %v2314_v1  ;;  %v2699_v19 = vor.u32 %v3419_v11, %v2698_v10  ;;  %v3411_v39 = vld [vmem:[#allocation2 + $0x394] sm:$0xf0]  ;;  %v2394_v45 = vld [vmem:[#allocation2 + $0x168] sm:$0xf] }
  0x62   :  { %1376 = vmatpush.bf16.msra.mxu3 %v2903_v17  ;;  %v3319_v17 = vld [vmem:[#allocation2 + $0xb4] sm:$0xf0]  ;;  %v2522_v48 = vld [vmem:[#allocation2 + $0x268] sm:$0xf] }
  0x63   :  { %v3311_v44 = vld [vmem:[#allocation2 + $0x74] sm:$0xf0]  ;;  %v2650_v50 = vld [vmem:[#allocation2 + $0x368] sm:$0xf] }
  0x64   :  { %1338 = vmatpush.bf16.msra.mxu0 %v2503_v23  ;;  %1351 = vmatpush.bf16.msra.mxu1 %v2631_v24  ;;  %v2682_v23 = vld [vmem:[#allocation2 + $0x3a8] sm:$0xf]  ;;  %v3415_v24 = vld [vmem:[#allocation2 + $0x3b4] sm:$0xf0]  ;;  %v2267_v52 = vor.u32 %v3311_v44, %v2266_v43 }
  0x65   :  { %1364 = vmatpush.bf16.msra.mxu2 %v2759_v26  ;;  %v2299_v26 = vor.u32 %v3319_v17, %v2298_v16  ;;  %v2683_v33 = vor.u32 %v3415_v24, %v2682_v23  ;;  %v3343_v47 = vld [vmem:[#allocation2 + $0x174] sm:$0xf0]  ;;  %v2250_v55 = vld [vmem:[#allocation2 + $0x48] sm:$0xf] }
  0x66   :  { %1377 = vmatpush.bf16.msra.mxu3 %v2887_v30  ;;  %v3315_v30 = vld [vmem:[#allocation2 + $0x94] sm:$0xf0]  ;;  %v2506_v60 = vld [vmem:[#allocation2 + $0x248] sm:$0xf] }
  0x67   :  { %v2283_v40 = vor.u32 %v3315_v30, %v2282_v29  ;;  %v3375_v49 = vld [vmem:[#allocation2 + $0x274] sm:$0xf0]  ;;  %v2234_v3 = vld [vmem:[#allocation2 + $0x28] sm:$0xf] }
  0x68   :  { %1339 = vmatpush.bf16.msra.mxu0 %v2487_v38  ;;  %1352 = vmatpush.bf16.msra.mxu1 %v2615_v41  ;;  %v2666_v38 = vld [vmem:[#allocation2 + $0x388] sm:$0xf]  ;;  %v2411_v41 = vor.u32 %v3347_v34, %v2410_v31  ;;  %v3407_v51 = vld [vmem:[#allocation2 + $0x374] sm:$0xf0]  ;;  %v2523_v54 = vor.u32 %v3375_v49, %v2522_v48  ;;  %v3325_v34 = vld [vmem:[#allocation2 + $0xec] sm:$0xf] }
  0x69   :  { %1365 = vmatpush.bf16.msra.mxu2 %v2743_v42  ;;  %v2539_v42 = vor.u32 %v3379_v37, %v2538_v36  ;;  %v3307_v56 = vld [vmem:[#allocation2 + $0x54] sm:$0xf0]  ;;  %v2362_v5 = vld [vmem:[#allocation2 + $0x128] sm:$0xf]  ;;  %v2332_v36 = vld [vmem:[#allocation2 + $0xf8] sm:$0xf0] }
  0x6a   :  { %1378 = vmatpush.bf16.msra.mxu3 %v2871_v46  ;;  %v2667_v46 = vor.u32 %v3411_v39, %v2666_v38  ;;  %v3339_v59 = vld [vmem:[#allocation2 + $0x154] sm:$0xf0]  ;;  %v2490_v10 = vld [vmem:[#allocation2 + $0x228] sm:$0xf]  ;;  %v3357_v39 = vld [vmem:[#allocation2 + $0x1ec] sm:$0xf]  ;;  %v2335_v44 = vor.u32 %v3325_v34, %v2332_v36 }
  0x6b   :  { %v3335_v7 = vld [vmem:[#allocation2 + $0x134] sm:$0xf0]  ;;  %v2218_v16 = vld [vmem:[#allocation2 + $0x8] sm:$0xf] }
  0x6c   :  { %1340 = vmatpush.bf16.msra.mxu0 %v2471_v53  ;;  %1353 = vmatpush.bf16.msra.mxu1 %v2599_v57  ;;  %v2395_v53 = vor.u32 %v3343_v47, %v2394_v45  ;;  %v2378_v57 = vld [vmem:[#allocation2 + $0x148] sm:$0xf]  ;;  %v3367_v11 = vld [vmem:[#allocation2 + $0x234] sm:$0xf0]  ;;  %v2363_v18 = vor.u32 %v3335_v7, %v2362_v5 }
  0x6d   :  { %1366 = vmatpush.bf16.msra.mxu2 %v2727_v58  ;;  %v2651_v58 = vor.u32 %v3407_v51, %v2650_v50  ;;  %v2379_v1 = vor.u32 %v3339_v59, %v2378_v57  ;;  %v3299_v17 = vld [vmem:[#allocation2 + $0x14] sm:$0xf0]  ;;  %v2346_v20 = vld [vmem:[#allocation2 + $0x108] sm:$0xf]  ;;  %v3321_v50 = vld [vmem:[#allocation2 + $0xcc] sm:$0xf] }
  0x6e   :  { %1379 = vmatpush.bf16.msra.mxu3 %v2855_v61  ;;  %v3371_v61 = vld [vmem:[#allocation2 + $0x254] sm:$0xf0]  ;;  %v2474_v22 = vld [vmem:[#allocation2 + $0x208] sm:$0xf]  ;;  %v2219_v31 = vor.u32 %v3299_v17, %v2218_v16  ;;  %v2316_v51 = vld [vmem:[#allocation2 + $0xd8] sm:$0xf0] }
  0x6f   :  { %1341 = vmatmul.bf16.vlgmr.msra.gmra.mxu0 %v3679_v8  ;;  %1354 = vmatmul.bf16.vlgmr.msra.gmra.mxu1 %v3686_v15  ;;  %v2507_v2 = vor.u32 %v3371_v61, %v2506_v60  ;;  %v3331_v21 = vld [vmem:[#allocation2 + $0x114] sm:$0xf0]  ;;  %v2970_v30 = vld [vmem:[#allocation2 + $0x5e8] sm:$0xf]  ;;  %v2412_v16 = vld [vmem:[#allocation2 + $0x198] sm:$0xf0] }
  0x70   :  { %1385 = vmatpush.bf16.msrb.mxu0 %v2331_v62  ;;  %1398 = vmatpush.bf16.msrb.mxu1 %v2459_v63  ;;  %v2634_v62 = vld [vmem:[#allocation2 + $0x348] sm:$0xf]  ;;  %v3403_v63 = vld [vmem:[#allocation2 + $0x354] sm:$0xf0]  ;;  %v2347_v37 = vor.u32 %v3331_v21, %v2346_v20 }
  0x71   :  { %1411 = vmatpush.bf16.msrb.mxu2 %v2587_v0  ;;  %1380 = vmatmul.bf16.vlgmr.msra.gmra.mxu3 %v3705_v35  ;;  %v2251_v0 = vor.u32 %v3307_v56, %v2250_v55  ;;  %v2635_v6 = vor.u32 %v3403_v63, %v2634_v62  ;;  %v3363_v24 = vld [vmem:[#allocation2 + $0x214] sm:$0xf0]  ;;  %v2826_v45 = vld [vmem:[#allocation2 + $0x4c8] sm:$0xf]  ;;  %v2319_v56 = vor.u32 %v3321_v50, %v2316_v51  ;;  %v3317_v62 = vld [vmem:[#allocation2 + $0xac] sm:$0xf] }
  0x72   :  { %1424 = vmatpush.bf16.msrb.mxu3 %v2715_v4  ;;  %1367 = vmatmul.bf16.vlgmr.msra.gmra.mxu2 %v3703_v32  ;;  %v3303_v4 = vld [vmem:[#allocation2 + $0x34] sm:$0xf0]  ;;  %v2475_v38 = vor.u32 %v3363_v24, %v2474_v22  ;;  %v2954_v47 = vld [vmem:[#allocation2 + $0x5c8] sm:$0xf]  ;;  %v2300_v63 = vld [vmem:[#allocation2 + $0xb8] sm:$0xf0] }
  0x73   :  { %v3455_v29 = vld [vmem:[#allocation2 + $0x4f4] sm:$0xf0]  ;;  %v2810_v57 = vld [vmem:[#allocation2 + $0x4a8] sm:$0xf] }
  0x74   :  { %1386 = vmatpush.bf16.msrb.mxu0 %v2315_v12  ;;  %1399 = vmatpush.bf16.msrb.mxu1 %v2443_v13  ;;  %v2618_v12 = vld [vmem:[#allocation2 + $0x328] sm:$0xf]  ;;  %v3399_v13 = vld [vmem:[#allocation2 + $0x334] sm:$0xf0] }
  0x75   :  { %1412 = vmatpush.bf16.msrb.mxu2 %v2571_v14  ;;  %v2235_v14 = vor.u32 %v3303_v4, %v2234_v3  ;;  %v2619_v23 = vor.u32 %v3399_v13, %v2618_v12  ;;  %v3483_v49 = vld [vmem:[#allocation2 + $0x5d4] sm:$0xf0]  ;;  %v2938_v59 = vld [vmem:[#allocation2 + $0x5a8] sm:$0xf]  ;;  %v2303_v4 = vor.u32 %v3317_v62, %v2300_v63  ;;  %v3313_v12 = vld [vmem:[#allocation2 + $0x8c] sm:$0xf] }
  0x76   :  { %1425 = vmatpush.bf16.msrb.mxu3 %v2699_v19  ;;  %v2491_v19 = vor.u32 %v3367_v11, %v2490_v10  ;;  %v2955_v55 = vor.u32 %v3483_v49, %v2954_v47  ;;  %v3479_v61 = vld [vmem:[#allocation2 + $0x5b4] sm:$0xf0]  ;;  %v2794_v5 = vld [vmem:[#allocation2 + $0x488] sm:$0xf]  ;;  %v2284_v13 = vld [vmem:[#allocation2 + $0x98] sm:$0xf0] }
  0x77   :  { %v2939_v3 = vor.u32 %v3479_v61, %v2938_v59  ;;  %v2922_v7 = vld [vmem:[#allocation2 + $0x588] sm:$0xf]  ;;  %v3475_v11 = vld [vmem:[#allocation2 + $0x594] sm:$0xf0]  ;;  %v3297_v63 = vld [vmem:[#allocation2 + $0xc] sm:$0xf] }
  0x78   :  { %1387 = vmatpush.bf16.msrb.mxu0 %v2299_v26  ;;  %1400 = vmatpush.bf16.msrb.mxu1 %v2427_v27  ;;  %v2602_v26 = vld [vmem:[#allocation2 + $0x308] sm:$0xf]  ;;  %v3395_v27 = vld [vmem:[#allocation2 + $0x314] sm:$0xf0] }
  0x79   :  { %1413 = vmatpush.bf16.msrb.mxu2 %v2555_v28  ;;  %v2842_v28 = vld [vmem:[#allocation2 + $0x4e8] sm:$0xf]  ;;  %v3439_v21 = vld [vmem:[#allocation2 + $0x474] sm:$0xf0] }
  0x7a   :  { %1426 = vmatpush.bf16.msrb.mxu3 %v2683_v33  ;;  %v3487_v33 = vld [vmem:[#allocation2 + $0x5f4] sm:$0xf0]  ;;  %v2778_v20 = vld [vmem:[#allocation2 + $0x468] sm:$0xf] }
  0x7b   :  { %v2971_v43 = vor.u32 %v3487_v33, %v2970_v30  ;;  %v2906_v22 = vld [vmem:[#allocation2 + $0x568] sm:$0xf]  ;;  %v3471_v24 = vld [vmem:[#allocation2 + $0x574] sm:$0xf0]  ;;  %v2779_v30 = vor.u32 %v3439_v21, %v2778_v20 }
  0x7c   :  { %1388 = vmatpush.bf16.msrb.mxu0 %v2283_v40  ;;  %1401 = vmatpush.bf16.msrb.mxu1 %v2411_v41  ;;  %v2460_v40 = vld [vmem:[#allocation2 + $0x1f8] sm:$0xf0]  ;;  %v2603_v41 = vor.u32 %v3395_v27, %v2602_v26  ;;  %v3309_v26 = vld [vmem:[#allocation2 + $0x6c] sm:$0xf]  ;;  %v2762_v34 = vld [vmem:[#allocation2 + $0x448] sm:$0xf] }
  0x7d   :  { %1414 = vmatpush.bf16.msrb.mxu2 %v2539_v42  ;;  %v2843_v42 = vor.u32 %v3455_v29, %v2842_v28  ;;  %v2463_v48 = vor.u32 %v3357_v39, %v2460_v40  ;;  %v2268_v27 = vld [vmem:[#allocation2 + $0x78] sm:$0xf0]  ;;  %v3341_v28 = vld [vmem:[#allocation2 + $0x16c] sm:$0xf]  ;;  %v3435_v36 = vld [vmem:[#allocation2 + $0x454] sm:$0xf0] }
  0x7e   :  { %1427 = vmatpush.bf16.msrb.mxu3 %v2667_v46  ;;  %v3451_v46 = vld [vmem:[#allocation2 + $0x4d4] sm:$0xf0]  ;;  %v2396_v29 = vld [vmem:[#allocation2 + $0x178] sm:$0xf0]  ;;  %v2271_v33 = vor.u32 %v3309_v26, %v2268_v27  ;;  %v3305_v40 = vld [vmem:[#allocation2 + $0x4c] sm:$0xf] }
  0x7f   :  { %v3467_v39 = vld [vmem:[#allocation2 + $0x554] sm:$0xf0]  ;;  %v2746_v47 = vld [vmem:[#allocation2 + $0x428] sm:$0xf]  ;;  %v2700_v27 = vld [vmem:[#allocation2 + $0x3d8] sm:$0xf0] }
  0x80   :  { %1389 = vmatpush.bf16.msrb.mxu0 %v2267_v52  ;;  %1402 = vmatpush.bf16.msrb.mxu1 %v2395_v53  ;;  %v3353_v52 = vld [vmem:[#allocation2 + $0x1cc] sm:$0xf]  ;;  %v2444_v53 = vld [vmem:[#allocation2 + $0x1d8] sm:$0xf0]  ;;  %v2874_v49 = vld [vmem:[#allocation2 + $0x528] sm:$0xf] }
  0x81   :  { %1415 = vmatpush.bf16.msrb.mxu2 %v2523_v54  ;;  %v2827_v54 = vor.u32 %v3451_v46, %v2826_v45  ;;  %v2447_v60 = vor.u32 %v3353_v52, %v2444_v53  ;;  %v3463_v51 = vld [vmem:[#allocation2 + $0x534] sm:$0xf0]  ;;  %v3301_v52 = vld [vmem:[#allocation2 + $0x2c] sm:$0xf]  ;;  %v2236_v53 = vld [vmem:[#allocation2 + $0x38] sm:$0xf0] }
  0x82   :  { %1428 = vmatpush.bf16.msrb.mxu3 %v2651_v58  ;;  %v3447_v58 = vld [vmem:[#allocation2 + $0x4b4] sm:$0xf0]  ;;  %v2875_v59 = vor.u32 %v3463_v51, %v2874_v49  ;;  %v2858_v61 = vld [vmem:[#allocation2 + $0x508] sm:$0xf]  ;;  %v3377_v49 = vld [vmem:[#allocation2 + $0x28c] sm:$0xf] }
  0x83   :  { %v3459_v62 = vld [vmem:[#allocation2 + $0x514] sm:$0xf0]  ;;  %v3409_v51 = vld [vmem:[#allocation2 + $0x38c] sm:$0xf] }
  0x84   :  { %1390 = vmatpush.bf16.msrb.mxu0 %v2251_v0  ;;  %1403 = vmatpush.bf16.msrb.mxu1 %v2379_v1  ;;  %v3349_v0 = vld [vmem:[#allocation2 + $0x1ac] sm:$0xf]  ;;  %v2428_v1 = vld [vmem:[#allocation2 + $0x1b8] sm:$0xf0] }
  0x85   :  { %1416 = vmatpush.bf16.msrb.mxu2 %v2507_v2  ;;  %v2811_v2 = vor.u32 %v3447_v58, %v2810_v57  ;;  %v2431_v10 = vor.u32 %v3349_v0, %v2428_v1  ;;  %v2730_v57 = vld [vmem:[#allocation2 + $0x408] sm:$0xf]  ;;  %v3427_v58 = vld [vmem:[#allocation2 + $0x414] sm:$0xf0]  ;;  %v2220_v1 = vld [vmem:[#allocation2 + $0x18] sm:$0xf0] }
  0x86   :  { %1429 = vmatpush.bf16.msrb.mxu3 %v2635_v6  ;;  %v3443_v6 = vld [vmem:[#allocation2 + $0x494] sm:$0xf0] }
  0x87   :  { %v2795_v17 = vor.u32 %v3443_v6, %v2794_v5  ;;  %v2588_v5 = vld [vmem:[#allocation2 + $0x2f8] sm:$0xf0]  ;;  %v3421_v6 = vld [vmem:[#allocation2 + $0x3ec] sm:$0xf] }
  0x88   :  { %1391 = vmatpush.bf16.msrb.mxu0 %v2235_v14  ;;  %1404 = vmatpush.bf16.msrb.mxu1 %v2363_v18  ;;  %v3345_v14 = vld [vmem:[#allocation2 + $0x18c] sm:$0xf]  ;;  %v2923_v18 = vor.u32 %v3475_v11, %v2922_v7  ;;  %v2731_v7 = vor.u32 %v3427_v58, %v2730_v57 }
  0x89   :  { %1417 = vmatpush.bf16.msrb.mxu2 %v2491_v19  ;;  %v2287_v19 = vor.u32 %v3313_v12, %v2284_v13  ;;  %v3453_v11 = vld [vmem:[#allocation2 + $0x4ec] sm:$0xf]  ;;  %v2844_v12 = vld [vmem:[#allocation2 + $0x4f8] sm:$0xf0]  ;;  %v2859_v13 = vor.u32 %v3459_v62, %v2858_v61 }
  0x8a   :  { %1430 = vmatpush.bf16.msrb.mxu3 %v2619_v23  ;;  %v2415_v23 = vor.u32 %v3345_v14, %v2412_v16  ;;  %v2223_v14 = vor.u32 %v3297_v63, %v2220_v1  ;;  %v3485_v16 = vld [vmem:[#allocation2 + $0x5ec] sm:$0xf]  ;;  %v2847_v21 = vor.u32 %v3453_v11, %v2844_v12  ;;  %v2652_v63 = vld [vmem:[#allocation2 + $0x378] sm:$0xf0] }
  0x8b   :  { %v3405_v61 = vld [vmem:[#allocation2 + $0x36c] sm:$0xf]  ;;  %v2780_v1 = vld [vmem:[#allocation2 + $0x478] sm:$0xf0] }
  0x8c   :  { %1392 = vmatpush.bf16.msrb.mxu0 %v2219_v31  ;;  %1405 = vmatpush.bf16.msrb.mxu1 %v2347_v37  ;;  %v2907_v31 = vor.u32 %v3471_v24, %v2906_v22  ;;  %v2890_v37 = vld [vmem:[#allocation2 + $0x548] sm:$0xf]  ;;  %v3385_v22 = vld [vmem:[#allocation2 + $0x2cc] sm:$0xf]  ;;  %v2508_v11 = vld [vmem:[#allocation2 + $0x258] sm:$0xf0] }
  0x8d   :  { %1418 = vmatpush.bf16.msrb.mxu2 %v2475_v38  ;;  %v2399_v38 = vor.u32 %v3341_v28, %v2396_v29  ;;  %v2891_v45 = vor.u32 %v3467_v39, %v2890_v37  ;;  %v3417_v24 = vld [vmem:[#allocation2 + $0x3cc] sm:$0xf]  ;;  %v2828_v29 = vld [vmem:[#allocation2 + $0x4d8] sm:$0xf0] }
  0x8e   :  { %1431 = vmatpush.bf16.msrb.mxu3 %v2603_v41  ;;  %v2252_v41 = vld [vmem:[#allocation2 + $0x58] sm:$0xf0]  ;;  %v3449_v28 = vld [vmem:[#allocation2 + $0x4cc] sm:$0xf] }
  0x8f   :  { %1393 = vmatmul.bf16.vlgmr.msrb.gmra.mxu0 %v3681_v9  ;;  %1406 = vmatmul.bf16.vlgmr.msrb.gmra.mxu1 %v3694_v25  ;;  %v2255_v46 = vor.u32 %v3305_v40, %v2252_v41  ;;  %v3381_v37 = vld [vmem:[#allocation2 + $0x2ac] sm:$0xf]  ;;  %v2684_v41 = vld [vmem:[#allocation2 + $0x3b8] sm:$0xf0] }
  0x90   :  { %1437 = vmatpush.bf16.msra.mxu0 %v2843_v42  ;;  %1450 = vmatpush.bf16.msra.mxu1 %v2971_v43  ;;  %v3337_v42 = vld [vmem:[#allocation2 + $0x14c] sm:$0xf]  ;;  %v2380_v43 = vld [vmem:[#allocation2 + $0x158] sm:$0xf0] }
  0x91   :  { %1463 = vmatpush.bf16.msra.mxu2 %v2335_v44  ;;  %1432 = vmatmul.bf16.vlgmr.msrb.gmra.mxu3 %v3686_v15  ;;  %v2763_v44 = vor.u32 %v3435_v36, %v2762_v34  ;;  %v2383_v50 = vor.u32 %v3337_v42, %v2380_v43  ;;  %v2703_v34 = vor.u32 %v3417_v24, %v2700_v27  ;;  %v3413_v39 = vld [vmem:[#allocation2 + $0x3ac] sm:$0xf]  ;;  %v2812_v43 = vld [vmem:[#allocation2 + $0x4b8] sm:$0xf0] }
  0x92   :  { %1476 = vmatpush.bf16.msra.mxu3 %v2463_v48  ;;  %1419 = vmatmul.bf16.vlgmr.msrb.gmra.mxu2 %v3679_v8  ;;  %v3431_v48 = vld [vmem:[#allocation2 + $0x434] sm:$0xf0]  ;;  %v2831_v36 = vor.u32 %v3449_v28, %v2828_v29  ;;  %v3445_v42 = vld [vmem:[#allocation2 + $0x4ac] sm:$0xf]  ;;  %v2620_v29 = vld [vmem:[#allocation2 + $0x338] sm:$0xf0] }
  0x93   :  { %v3401_v12 = vld [vmem:[#allocation2 + $0x34c] sm:$0xf] }
  0x94   :  { %1438 = vmatpush.bf16.msra.mxu0 %v2827_v54  ;;  %1451 = vmatpush.bf16.msra.mxu1 %v2955_v55  ;;  %v3333_v54 = vld [vmem:[#allocation2 + $0x12c] sm:$0xf]  ;;  %v2364_v55 = vld [vmem:[#allocation2 + $0x138] sm:$0xf0] }
  0x95   :  { %1464 = vmatpush.bf16.msra.mxu2 %v2319_v56  ;;  %v2747_v56 = vor.u32 %v3431_v48, %v2746_v47  ;;  %v2367_v0 = vor.u32 %v3333_v54, %v2364_v55  ;;  %v2687_v47 = vor.u32 %v3413_v39, %v2684_v41  ;;  %v2815_v48 = vor.u32 %v3445_v42, %v2812_v43  ;;  %v3441_v54 = vld [vmem:[#allocation2 + $0x48c] sm:$0xf]  ;;  %v2796_v55 = vld [vmem:[#allocation2 + $0x498] sm:$0xf0] }
  0x96   :  { %1477 = vmatpush.bf16.msra.mxu3 %v2447_v60  ;;  %v2239_v60 = vor.u32 %v3301_v52, %v2236_v53  ;;  %v2668_v53 = vld [vmem:[#allocation2 + $0x398] sm:$0xf0]  ;;  %v3365_v24 = vld [vmem:[#allocation2 + $0x22c] sm:$0xf] }
  0x97   :  { %v2671_v58 = vor.u32 %v3409_v51, %v2668_v53  ;;  %v3397_v27 = vld [vmem:[#allocation2 + $0x32c] sm:$0xf]  ;;  %v2476_v43 = vld [vmem:[#allocation2 + $0x218] sm:$0xf0]  ;;  %v3034_v51 = vld [vmem:[#allocation4 + $0x70] sm:$0xf] }
  0x98   :  { %1439 = vmatpush.bf16.msra.mxu0 %v2811_v2  ;;  %1452 = vmatpush.bf16.msra.mxu1 %v2939_v3  ;;  %v3329_v2 = vld [vmem:[#allocation2 + $0x10c] sm:$0xf]  ;;  %v2348_v3 = vld [vmem:[#allocation2 + $0x118] sm:$0xf0]  ;;  %v2623_v41 = vor.u32 %v3397_v27, %v2620_v29  ;;  %v3511_v27 = vld [vmem:[#allocation4 + $0xb4] sm:$0xf0] }
  0x99   :  { %1465 = vmatpush.bf16.msra.mxu2 %v2303_v4  ;;  %v3389_v4 = vld [vmem:[#allocation2 + $0x2ec] sm:$0xf]  ;;  %v2994_v29 = vld [vmem:[#allocation4 + $0x20] sm:$0xf] }
  0x9a   :  { %1478 = vmatpush.bf16.msra.mxu3 %v2431_v10  ;;  %v2716_v10 = vld [vmem:[#allocation2 + $0x3f8] sm:$0xf0]  ;;  %v3361_v39 = vld [vmem:[#allocation2 + $0x20c] sm:$0xf] }
  0x9b   :  { %v2719_v20 = vor.u32 %v3421_v6, %v2716_v10  ;;  %v2655_v6 = vor.u32 %v3405_v61, %v2652_v63  ;;  %v3369_v10 = vld [vmem:[#allocation2 + $0x24c] sm:$0xf]  ;;  %v2479_v53 = vor.u32 %v3361_v39, %v2476_v43  ;;  %v3501_v63 = vld [vmem:[#allocation4 + $0x64] sm:$0xf0]  ;;  %v2986_v43 = vld [vmem:[#allocation4 + $0x10] sm:$0xf] }
  0x9c   :  { %1440 = vmatpush.bf16.msra.mxu0 %v2795_v17  ;;  %1453 = vmatpush.bf16.msra.mxu1 %v2923_v18  ;;  %v2972_v17 = vld [vmem:[#allocation2 + $0x5f8] sm:$0xf0]  ;;  %v2351_v18 = vor.u32 %v3329_v2, %v2348_v3  ;;  %v3469_v2 = vld [vmem:[#allocation2 + $0x56c] sm:$0xf] }
  0x9d   :  { %1466 = vmatpush.bf16.msra.mxu2 %v2287_v19  ;;  %v2591_v19 = vor.u32 %v3389_v4, %v2588_v5  ;;  %v2975_v26 = vor.u32 %v3485_v16, %v2972_v17  ;;  %v2908_v3 = vld [vmem:[#allocation2 + $0x578] sm:$0xf0]  ;;  %v3433_v16 = vld [vmem:[#allocation2 + $0x44c] sm:$0xf] }
  0x9e   :  { %1479 = vmatpush.bf16.msra.mxu3 %v2415_v23  ;;  %v2572_v23 = vld [vmem:[#allocation2 + $0x2d8] sm:$0xf0] }
  0x9f   :  { %v2764_v17 = vld [vmem:[#allocation2 + $0x458] sm:$0xf0] }
  0xa0   :  { %1441 = vmatpush.bf16.msra.mxu0 %v2779_v30  ;;  %1454 = vmatpush.bf16.msra.mxu1 %v2907_v31  ;;  %v3481_v30 = vld [vmem:[#allocation2 + $0x5cc] sm:$0xf]  ;;  %v2956_v31 = vld [vmem:[#allocation2 + $0x5d8] sm:$0xf0] }
  0xa1   :  { %1467 = vmatpush.bf16.msra.mxu2 %v2271_v33  ;;  %v2575_v33 = vor.u32 %v3385_v22, %v2572_v23  ;;  %v2959_v40 = vor.u32 %v3481_v30, %v2956_v31  ;;  %v2767_v23 = vor.u32 %v3433_v16, %v2764_v17  ;;  %v3429_v30 = vld [vmem:[#allocation2 + $0x42c] sm:$0xf]  ;;  %v2748_v31 = vld [vmem:[#allocation2 + $0x438] sm:$0xf0]  ;;  %v3010_v17 = vld [vmem:[#allocation4 + $0x40] sm:$0xf] }
  0xa2   :  { %1480 = vmatpush.bf16.msra.mxu3 %v2399_v38  ;;  %v2556_v38 = vld [vmem:[#allocation2 + $0x2b8] sm:$0xf0]  ;;  %v2751_v42 = vor.u32 %v3429_v30, %v2748_v31  ;;  %v3493_v30 = vld [vmem:[#allocation4 + $0x24] sm:$0xf0] }
  0xa4   :  { %1442 = vmatpush.bf16.msra.mxu0 %v2763_v44  ;;  %1455 = vmatpush.bf16.msra.mxu1 %v2891_v45  ;;  %v3477_v44 = vld [vmem:[#allocation2 + $0x5ac] sm:$0xf]  ;;  %v2940_v45 = vld [vmem:[#allocation2 + $0x5b8] sm:$0xf0] }
  0xa5   :  { %1468 = vmatpush.bf16.msra.mxu2 %v2255_v46  ;;  %v2559_v46 = vor.u32 %v3381_v37, %v2556_v38  ;;  %v2943_v52 = vor.u32 %v3477_v44, %v2940_v45  ;;  %v3393_v44 = vld [vmem:[#allocation2 + $0x30c] sm:$0xf]  ;;  %v2604_v45 = vld [vmem:[#allocation2 + $0x318] sm:$0xf0] }
  0xa6   :  { %1481 = vmatpush.bf16.msra.mxu3 %v2383_v50  ;;  %v2540_v50 = vld [vmem:[#allocation2 + $0x298] sm:$0xf0] }
  0xa7   :  { %v2543_v57 = vor.u32 %v3377_v49, %v2540_v50  ;;  %v3457_v49 = vld [vmem:[#allocation2 + $0x50c] sm:$0xf]  ;;  %v2860_v50 = vld [vmem:[#allocation2 + $0x518] sm:$0xf0] }
  0xa8   :  { %1443 = vmatpush.bf16.msra.mxu0 %v2747_v56  ;;  %1456 = vmatpush.bf16.msra.mxu1 %v2875_v59  ;;  %v3473_v56 = vld [vmem:[#allocation2 + $0x58c] sm:$0xf] }
  0xa9   :  { %1469 = vmatpush.bf16.msra.mxu2 %v2239_v60  ;;  %v3373_v59 = vld [vmem:[#allocation2 + $0x26c] sm:$0xf]  ;;  %v2524_v60 = vld [vmem:[#allocation2 + $0x278] sm:$0xf0] }
  0xaa   :  { %1482 = vmatpush.bf16.msra.mxu3 %v2367_v0  ;;  %v3437_v0 = vld [vmem:[#allocation2 + $0x46c] sm:$0xf]  ;;  %v2527_v4 = vor.u32 %v3373_v59, %v2524_v60 }
  0xac   :  { %1444 = vmatpush.bf16.msra.mxu0 %v2731_v7  ;;  %1457 = vmatpush.bf16.msra.mxu1 %v2859_v13  ;;  %v2783_v7 = vor.u32 %v3437_v0, %v2780_v1  ;;  %v2911_v13 = vor.u32 %v3469_v2, %v2908_v3  ;;  %v3090_v2 = vld [vmem:[#allocation4 + $0xe0] sm:$0xf]  ;;  %v3517_v3 = vld [vmem:[#allocation4 + $0xe4] sm:$0xf0] }
  0xad   :  { %1470 = vmatpush.bf16.msra.mxu2 %v2223_v14  ;;  %v2636_v14 = vld [vmem:[#allocation2 + $0x358] sm:$0xf0] }
  0xae   :  { %1483 = vmatpush.bf16.msra.mxu3 %v2351_v18  ;;  %v3465_v18 = vld [vmem:[#allocation2 + $0x54c] sm:$0xf]  ;;  %v2639_v22 = vor.u32 %v3401_v12, %v2636_v14  ;;  %v3082_v12 = vld [vmem:[#allocation4 + $0xd0] sm:$0xf] }
  0xaf   :  { %1445 = vmatmul.bf16.vlgmr.msra.gmra.mxu0 %v3703_v32  ;;  %1458 = vmatmul.bf16.vlgmr.msra.gmra.mxu1 %v3705_v35 }
  0xb0   :  { %1489 = vmatpush.bf16.msrb.mxu0 %v2591_v19  ;;  %1502 = vmatpush.bf16.msrb.mxu1 %v2719_v20  ;;  %v2892_v19 = vld [vmem:[#allocation2 + $0x558] sm:$0xf0]  ;;  %v2511_v20 = vor.u32 %v3369_v10, %v2508_v11  ;;  %v3499_v10 = vld [vmem:[#allocation4 + $0x54] sm:$0xf0]  ;;  %v3091_v11 = vor.u32 %v3517_v3, %v3090_v2  ;;  %v3516_v3 = vld [vmem:[#allocation4 + $0xe4] sm:$0xf] }
  0xb1   :  { %1515 = vmatpush.bf16.msrb.mxu2 %v2847_v21  ;;  %1484 = vmatmul.bf16.vlgmr.msra.gmra.mxu3 %v3694_v25  ;;  %v2799_v25 = vor.u32 %v3441_v54, %v2796_v55  ;;  %v3725_v21 = vpop.f32.mrf.mxu1  ;;  %v2895_v28 = vor.u32 %v3465_v18, %v2892_v19  ;;  %v3734_v54 = vld [vmem:[%s3811_s2] sm:$0xf]  ;;  %v3098_v55 = vld [vmem:[#allocation4 + $0xf0] sm:$0xf]  ;;  %v3513_v19 = vld [vmem:[#allocation4 + $0xc4] sm:$0xf0] }
  0xb2   :  { %1528 = vmatpush.bf16.msrb.mxu3 %v2975_v26  ;;  %1471 = vmatmul.bf16.vlgmr.msra.gmra.mxu2 %v3681_v9  ;;  %v2924_v9 = vld [vmem:[#allocation2 + $0x598] sm:$0xf0]  ;;  %v261_v61 = vperm.slane %v3734_v54, 0  ;;  %v3074_v18 = vld [vmem:[#allocation4 + $0xc0] sm:$0xf]  ;;  %v262_v2 = vperm.slane %v3734_v54, 1 }
  0xb3   :  { %v2927_v62 = vor.u32 %v3473_v56, %v2924_v9  ;;  %v2492_v26 = vld [vmem:[#allocation2 + $0x238] sm:$0xf0]  ;;  %v3519_v56 = vld [vmem:[#allocation4 + $0xf4] sm:$0xf0] }
  0xb4   :  { %1490 = vmatpush.bf16.msrb.mxu0 %v2575_v33  ;;  %1503 = vmatpush.bf16.msrb.mxu1 %v2703_v34  ;;  %v3723_v5 = vpop.f32.mrf.mxu0  ;;  %v3461_v34 = vld [vmem:[#allocation2 + $0x52c] sm:$0xf]  ;;  %v3729_v37 = vpop.f32.mrf.mxu3  ;;  %v2495_v38 = vor.u32 %v3365_v24, %v2492_v26  ;;  %v3099_v0 = vor.u32 %v3519_v56, %v3098_v55  ;;  %v3495_v24 = vld [vmem:[#allocation4 + $0x34] sm:$0xf0]  ;;  %v3066_v26 = vld [vmem:[#allocation4 + $0xb0] sm:$0xf] }
  0xb5   :  { %1516 = vmatpush.bf16.msrb.mxu2 %v2831_v36  ;;  %v2876_v36 = vld [vmem:[#allocation2 + $0x538] sm:$0xf0]  ;;  %v3067_v31 = vor.u32 %v3511_v27, %v3066_v26  ;;  %v3042_v56 = vld [vmem:[#allocation4 + $0x80] sm:$0xf]  ;;  %v3512_v27 = vld [vmem:[#allocation4 + $0xc4] sm:$0xf] }
  0xb6   :  { %1529 = vmatpush.bf16.msrb.mxu3 %v2959_v40 }
  0xb8   :  { %1491 = vmatpush.bf16.msrb.mxu0 %v2559_v46  ;;  %1504 = vmatpush.bf16.msrb.mxu1 %v2687_v47  ;;  %v2879_v46 = vor.u32 %v3461_v34, %v2876_v36  ;;  %v3425_v47 = vld [vmem:[#allocation2 + $0x40c] sm:$0xf]  ;;  %v3058_v36 = vld [vmem:[#allocation4 + $0xa0] sm:$0xf] }
  0xb9   :  { %1517 = vmatpush.bf16.msrb.mxu2 %v2815_v48  ;;  %v3727_v33 = vpop.f32.mrf.mxu2  ;;  %v2732_v48 = vld [vmem:[#allocation2 + $0x418] sm:$0xf0]  ;;  %v1253_v9 = vpop.f32.mrf.mxu1 }
  0xba   :  { %1530 = vmatpush.bf16.msrb.mxu3 %v2943_v52  ;;  %v3503_v52 = vld [vmem:[#allocation4 + $0x74] sm:$0xf0]  ;;  %v3505_v9 = vld [vmem:[#allocation4 + $0x84] sm:$0xf0] }
  0xbb   :  { %v3035_v59 = vor.u32 %v3503_v52, %v3034_v51  ;;  %v3502_v51 = vld [vmem:[#allocation4 + $0x74] sm:$0xf] }
  0xbc   :  { %1492 = vmatpush.bf16.msrb.mxu0 %v2543_v57  ;;  %1505 = vmatpush.bf16.msrb.mxu1 %v2671_v58  ;;  %v1240_v40 = vpop.f32.mrf.mxu0  ;;  %v2607_v57 = vor.u32 %v3393_v44, %v2604_v45  ;;  %v2735_v58 = vor.u32 %v3425_v47, %v2732_v48  ;;  %v1279_v1 = vpop.f32.mrf.mxu3  ;;  %v3491_v44 = vld [vmem:[#allocation4 + $0x14] sm:$0xf0] }
  0xbd   :  { %1518 = vmatpush.bf16.msrb.mxu2 %v2799_v25  ;;  %v2863_v25 = vor.u32 %v3457_v49, %v2860_v50  ;;  %v2995_v40 = vor.u32 %v3493_v30, %v2994_v29  ;;  %v2987_v47 = vor.u32 %v3491_v44, %v2986_v43  ;;  %v2978_v49 = vld [vmem:[#allocation4] sm:$0xf]  ;;  %v3489_v50 = vld [vmem:[#allocation4 + $0x4] sm:$0xf0]  ;;  %v3068_v43 = vld [vmem:[#allocation4 + $0xb8] sm:$0xf0] }
  0xbe   :  { %1531 = vmatpush.bf16.msrb.mxu3 %v2927_v62  ;;  %v3026_v62 = vld [vmem:[#allocation4 + $0x60] sm:$0xf]  ;;  %v3529_v30 = vld [vmem:[#allocation4 + $0x144] sm:$0xf0] }
  0xbf   :  { %v3138_v29 = vld [vmem:[#allocation4 + $0x140] sm:$0xf] }
  0xc0   :  { %1493 = vmatpush.bf16.msrb.mxu0 %v2527_v4  ;;  %1506 = vmatpush.bf16.msrb.mxu1 %v2655_v6  ;;  %v3027_v4 = vor.u32 %v3501_v63, %v3026_v62  ;;  %v1239_v6 = vadd.f32 %v3723_v5, %v261_v61  ;;  %v3043_v62 = vor.u32 %v3505_v9, %v3042_v56  ;;  %v3500_v63 = vld [vmem:[#allocation4 + $0x64] sm:$0xf]  ;;  %v3122_v9 = vld [vmem:[#allocation4 + $0x120] sm:$0xf] }
  0xc1   :  { %1519 = vmatpush.bf16.msrb.mxu2 %v2783_v7  ;;  %v1266_v60 = vpop.f32.mrf.mxu2  ;;  %v3018_v7 = vld [vmem:[#allocation4 + $0x50] sm:$0xf]  ;;  %v3139_v44 = vor.u32 %v3529_v30, %v3138_v29  ;;  %v3551_v29 = vld [vmem:[#allocation4 + $0x1f4] sm:$0xf0] }
  0xc2   :  { %1532 = vmatpush.bf16.msrb.mxu3 %v2911_v13  ;;  %v3515_v13 = vld [vmem:[#allocation4 + $0xd4] sm:$0xf0]  ;;  %v3019_v14 = vor.u32 %v3499_v10, %v3018_v7  ;;  %v1252_v16 = vadd.f32 %v3725_v21, %v1239_v6  ;;  %v3162_v6 = vld [vmem:[#allocation4 + $0x170] sm:$0xf] }
  0xc3   :  { %v3083_v5 = vor.u32 %v3515_v13, %v3082_v12  ;;  %v3535_v7 = vld [vmem:[#allocation4 + $0x174] sm:$0xf0]  ;;  %v3154_v13 = vld [vmem:[#allocation4 + $0x160] sm:$0xf] }
  0xc4   :  { %1494 = vmatpush.bf16.msrb.mxu0 %v2511_v20  ;;  %1507 = vmatpush.bf16.msrb.mxu1 %v2639_v22  ;;  %v3163_v12 = vor.u32 %v3535_v7, %v3162_v6  ;;  %v3523_v6 = vld [vmem:[#allocation4 + $0x114] sm:$0xf0] }
  0xc5   :  { %1520 = vmatpush.bf16.msrb.mxu2 %v2767_v23  ;;  %v3002_v23 = vld [vmem:[#allocation4 + $0x30] sm:$0xf] }
  0xc6   :  { %1533 = vmatpush.bf16.msrb.mxu3 %v2895_v28  ;;  %v3003_v21 = vor.u32 %v3495_v24, %v3002_v23  ;;  %v3496_v23 = vld [vmem:[#allocation4 + $0x44] sm:$0xf]  ;;  %v3012_v24 = vld [vmem:[#allocation4 + $0x48] sm:$0xf0] }
  0xc8   :  { %1495 = vmatpush.bf16.msrb.mxu0 %v2495_v38  ;;  %1508 = vmatpush.bf16.msrb.mxu1 %v2623_v41  ;;  %v3509_v38 = vld [vmem:[#allocation4 + $0xa4] sm:$0xf0] }
  0xc9   :  { %1521 = vmatpush.bf16.msrb.mxu2 %v2751_v42  ;;  %v3059_v45 = vor.u32 %v3509_v38, %v3058_v36  ;;  %v3494_v36 = vld [vmem:[#allocation4 + $0x34] sm:$0xf]  ;;  %v3004_v38 = vld [vmem:[#allocation4 + $0x38] sm:$0xf0] }
  0xca   :  { %1534 = vmatpush.bf16.msrb.mxu3 %v2879_v46  ;;  %v3050_v46 = vld [vmem:[#allocation4 + $0x90] sm:$0xf] }
  0xcc   :  { %1496 = vmatpush.bf16.msrb.mxu0 %v2479_v53  ;;  %1509 = vmatpush.bf16.msrb.mxu1 %v2607_v57  ;;  %v1290_v20 = vpop.f32.mrf.mxu0  ;;  %v3036_v53 = vld [vmem:[#allocation4 + $0x78] sm:$0xf0] }
  0xcd   :  { %1522 = vmatpush.bf16.msrb.mxu2 %v2735_v58  ;;  %v3518_v58 = vld [vmem:[#allocation4 + $0xf4] sm:$0xf]  ;;  %v3039_v61 = vor.u32 %v3502_v51, %v3036_v53  ;;  %v3508_v51 = vld [vmem:[#allocation4 + $0xa4] sm:$0xf] }
  0xce   :  { %1535 = vmatpush.bf16.msrb.mxu3 %v2863_v25  ;;  %v3100_v25 = vld [vmem:[#allocation4 + $0xf8] sm:$0xf0] }
  0xcf   :  { %1497 = vmatmul.bf16.vlgmr.msrb.gmra.mxu0 %v3679_v8  ;;  %1510 = vmatmul.bf16.vlgmr.msrb.gmra.mxu1 %v3686_v15  ;;  %v3497_v8 = vld [vmem:[#allocation4 + $0x44] sm:$0xf0]  ;;  %v1303_v15 = vpop.f32.mrf.mxu1  ;;  %v3103_v1 = vor.u32 %v3518_v58, %v3100_v25 }
  0xd0   :  { %1939 = vmatpush.bf16.msra.mxu0 %v3035_v59  ;;  %1952 = vmatpush.bf16.msra.mxu1 %v3099_v0  ;;  %v3011_v22 = vor.u32 %v3497_v8, %v3010_v17  ;;  %v2979_v59 = vor.u32 %v3489_v50, %v2978_v49  ;;  %v3028_v0 = vld [vmem:[#allocation4 + $0x68] sm:$0xf0]  ;;  %v3020_v17 = vld [vmem:[#allocation4 + $0x58] sm:$0xf0] }
  0xd1   :  { %1523 = vmatmul.bf16.vlgmr.msrb.gmra.mxu2 %v3703_v32  ;;  %1536 = vmatmul.bf16.vlgmr.msrb.gmra.mxu3 %v3705_v35  ;;  %v1265_v32 = vadd.f32 %v3727_v33, %v1252_v16  ;;  %v3075_v35 = vor.u32 %v3513_v19, %v3074_v18  ;;  %v3498_v16 = vld [vmem:[#allocation4 + $0x54] sm:$0xf]  ;;  %v3084_v19 = vld [vmem:[#allocation4 + $0xd8] sm:$0xf0] }
  0xd2   :  { %v3514_v18 = vld [vmem:[#allocation4 + $0xd4] sm:$0xf]  ;;  %1965 = vmatpush.bf16.msra.mxu2 %v3163_v12  ;;  %v3488_v12 = vld [vmem:[#allocation4 + $0x4] sm:$0xf] }
  0xd3   :  { %v1278_v28 = vadd.f32 %v3729_v37, %v1265_v32  ;;  %v3507_v37 = vld [vmem:[#allocation4 + $0x94] sm:$0xf0]  ;;  %v3023_v32 = vor.u32 %v3498_v16, %v3020_v17  ;;  %v3504_v16 = vld [vmem:[#allocation4 + $0x84] sm:$0xf]  ;;  %v3044_v17 = vld [vmem:[#allocation4 + $0x88] sm:$0xf0] }
  0xd4   :  { %1940 = vmatpush.bf16.msra.mxu0 %v3027_v4  ;;  %1953 = vmatpush.bf16.msra.mxu1 %v3091_v11  ;;  %v3745_v39 = vpop.f32.mrf.mxu3  ;;  %v1292_v33 = vpop.f32.mrf.mxu0  ;;  %v3051_v52 = vor.u32 %v3507_v37, %v3050_v46  ;;  %v3092_v4 = vld [vmem:[#allocation4 + $0xe8] sm:$0xf0]  ;;  %v3031_v11 = vor.u32 %v3500_v63, %v3028_v0  ;;  %v3007_v37 = vor.u32 %v3494_v36, %v3004_v38  ;;  %v3506_v63 = vld [vmem:[#allocation4 + $0x94] sm:$0xf]  ;;  %v3052_v0 = vld [vmem:[#allocation4 + $0x98] sm:$0xf0] }
  0xd5   :  { %v1316_v34 = vpop.f32.mrf.mxu2  ;;  %v1291_v42 = vadd.f32 %v1290_v20, %v1278_v28  ;;  %v3095_v8 = vor.u32 %v3516_v3, %v3092_v4  ;;  %v3114_v4 = vld [vmem:[#allocation4 + $0x110] sm:$0xf] }
  0xd7   :  { %v1305_v41 = vpop.f32.mrf.mxu1  ;;  %v1304_v48 = vadd.f32 %v1303_v15, %v1291_v42  ;;  %v3531_v15 = vld [vmem:[#allocation4 + $0x154] sm:$0xf0]  ;;  %v3510_v42 = vld [vmem:[#allocation4 + $0xb4] sm:$0xf] }
  0xd8   :  { %1941 = vmatpush.bf16.msra.mxu0 %v3019_v14  ;;  %1954 = vmatpush.bf16.msra.mxu1 %v3083_v5  ;;  %v3533_v14 = vld [vmem:[#allocation4 + $0x164] sm:$0xf0]  ;;  %v1317_v5 = vadd.f32 %v1316_v34, %v262_v2  ;;  %v3071_v49 = vor.u32 %v3510_v42, %v3068_v43  ;;  %v3528_v43 = vld [vmem:[#allocation4 + $0x144] sm:$0xf] }
  0xd9   :  { %v1541_v60 = vmax.f32 %v1304_v48, 0.0  ;;  %v3155_v20 = vor.u32 %v3533_v14, %v3154_v13  ;;  %v2996_v48 = vld [vmem:[#allocation4 + $0x28] sm:$0xf0]  ;;  %v3055_v14 = vor.u32 %v3506_v63, %v3052_v0  ;;  %v3186_v0 = vld [vmem:[#allocation4 + $0x1a0] sm:$0xf] }
  0xda   :  { %v1330_v26 = vadd.f32 %v3745_v39, %v1317_v5  ;;  %v3130_v39 = vld [vmem:[#allocation4 + $0x130] sm:$0xf]  ;;  %v2980_v13 = vld [vmem:[#allocation4 + $0x8] sm:$0xf0]  ;;  %v3115_v5 = vor.u32 %v3523_v6, %v3114_v4  ;;  %v3520_v6 = vld [vmem:[#allocation4 + $0x104] sm:$0xf] }
  0xdb   :  { %v3748_v10 = vpack.c.bf16 %v1541_v60, %v1541_v60  ;;  %1966 = vmatpush.bf16.msra.mxu2 %v3155_v20  ;;  %v2988_v60 = vld [vmem:[#allocation4 + $0x18] sm:$0xf0]  ;;  %v3521_v20 = vld [vmem:[#allocation4 + $0x104] sm:$0xf0] }
  0xdc   :  { %1942 = vmatpush.bf16.msra.mxu0 %v3011_v22  ;;  %1955 = vmatpush.bf16.msra.mxu1 %v3075_v35  ;;  %v1331_v57 = vpop.f32.mrf.mxu3  ;;  %v3146_v22 = vld [vmem:[#allocation4 + $0x150] sm:$0xf]  ;;  %v3087_v35 = vor.u32 %v3514_v18, %v3084_v19  ;;  %v3106_v19 = vld [vmem:[#allocation4 + $0x100] sm:$0xf] }
  0xdd   :  { %v1318_v55 = vpop.f32.mrf.mxu2  ;;  %v3147_v28 = vor.u32 %v3531_v15, %v3146_v22  ;;  %v3525_v57 = vld [vmem:[#allocation4 + $0x124] sm:$0xf0]  ;;  %v2983_v22 = vor.u32 %v3488_v12, %v2980_v13  ;;  %v3534_v15 = vld [vmem:[#allocation4 + $0x174] sm:$0xf]  ;;  %v3178_v13 = vld [vmem:[#allocation4 + $0x190] sm:$0xf] }
  0xde   :  { %v3123_v2 = vor.u32 %v3525_v57, %v3122_v9  ;;  %v3124_v57 = vld [vmem:[#allocation4 + $0x128] sm:$0xf0] }
  0xdf   :  { %1967 = vmatpush.bf16.msra.mxu2 %v3147_v28  ;;  %v3226_v28 = vld [vmem:[#allocation4 + $0x1f0] sm:$0xf] }
  0xe0   :  { %1943 = vmatpush.bf16.msra.mxu0 %v3003_v21  ;;  %1956 = vmatpush.bf16.msra.mxu1 %v3067_v31  ;;  %v3076_v21 = vld [vmem:[#allocation4 + $0xc8] sm:$0xf0]  ;;  %v3015_v31 = vor.u32 %v3496_v23, %v3012_v24  ;;  %v3047_v23 = vor.u32 %v3504_v16, %v3044_v17  ;;  %v3107_v24 = vor.u32 %v3521_v20, %v3106_v19  ;;  %v3537_v19 = vld [vmem:[#allocation4 + $0x184] sm:$0xf0] }
  0xe1   :  { %v3079_v33 = vor.u32 %v3512_v27, %v3076_v21  ;;  %v3156_v27 = vld [vmem:[#allocation4 + $0x168] sm:$0xf0]  ;;  %v3227_v30 = vor.u32 %v3551_v29, %v3226_v28 }
  0xe3   :  { %1968 = vmatpush.bf16.msra.mxu2 %v3139_v44  ;;  %1978 = vmatpush.bf16.msra.mxu3 %v3227_v30  ;;  %v3140_v44 = vld [vmem:[#allocation4 + $0x148] sm:$0xf0]  ;;  %v3546_v30 = vld [vmem:[#allocation4 + $0x1d4] sm:$0xf] }
  0xe4   :  { %1944 = vmatpush.bf16.msra.mxu0 %v2995_v40  ;;  %1957 = vmatpush.bf16.msra.mxu1 %v3059_v45  ;;  %v3527_v45 = vld [vmem:[#allocation4 + $0x134] sm:$0xf0] }
  0xe5   :  { %v3131_v53 = vor.u32 %v3527_v45, %v3130_v39  ;;  %v3210_v39 = vld [vmem:[#allocation4 + $0x1d0] sm:$0xf]  ;;  %v3547_v45 = vld [vmem:[#allocation4 + $0x1d4] sm:$0xf0] }
  0xe7   :  { %1969 = vmatpush.bf16.msra.mxu2 %v3131_v53  ;;  %v3545_v53 = vld [vmem:[#allocation4 + $0x1c4] sm:$0xf0] }
  0xe8   :  { %1945 = vmatpush.bf16.msra.mxu0 %v2987_v47  ;;  %1958 = vmatpush.bf16.msra.mxu1 %v3051_v52  ;;  %v3492_v47 = vld [vmem:[#allocation4 + $0x24] sm:$0xf]  ;;  %v3060_v52 = vld [vmem:[#allocation4 + $0xa8] sm:$0xf0] }
  0xe9   :  { %v2999_v58 = vor.u32 %v3492_v47, %v2996_v48  ;;  %v3526_v47 = vld [vmem:[#allocation4 + $0x134] sm:$0xf]  ;;  %v3132_v48 = vld [vmem:[#allocation4 + $0x138] sm:$0xf0] }
  0xeb   :  { %1970 = vmatpush.bf16.msra.mxu2 %v3123_v2 }
  0xec   :  { %1946 = vmatpush.bf16.msra.mxu0 %v2979_v59  ;;  %1959 = vmatpush.bf16.msra.mxu1 %v3043_v62  ;;  %v1342_v34 = vpop.f32.mrf.mxu0  ;;  %v1355_v41 = vpop.f32.mrf.mxu1  ;;  %v3490_v59 = vld [vmem:[#allocation4 + $0x14] sm:$0xf] }
  0xed   :  { %v1343_v40 = vadd.f32 %v1342_v34, %v1330_v26  ;;  %v2991_v7 = vor.u32 %v3490_v59, %v2988_v60  ;;  %v3532_v26 = vld [vmem:[#allocation4 + $0x164] sm:$0xf]  ;;  %v3148_v34 = vld [vmem:[#allocation4 + $0x158] sm:$0xf0]  ;;  %v263_v60 = vperm.slane %v3734_v54, 2 }
  0xee   :  { %v3159_v21 = vor.u32 %v3532_v26, %v3156_v27  ;;  %v3220_v26 = vld [vmem:[#allocation4 + $0x1e8] sm:$0xf0] }
  0xef   :  { %1947 = vmatmul.bf16.vlgmr.msra.gmra.mxu0 %v3748_v10  ;;  %v1356_v46 = vadd.f32 %v1355_v41, %v1343_v40  ;;  %1971 = vmatpush.bf16.msra.mxu2 %v3115_v5  ;;  %v3218_v40 = vld [vmem:[#allocation4 + $0x1e0] sm:$0xf]  ;;  %v3549_v41 = vld [vmem:[#allocation4 + $0x1e4] sm:$0xf0] }
  0xf0   :  { %1991 = vmatpush.bf16.msrb.mxu0 %v3039_v61  ;;  %2004 = vmatpush.bf16.msrb.mxu1 %v3103_v1  ;;  %v3063_v61 = vor.u32 %v3508_v51, %v3060_v52  ;;  %v3219_v42 = vor.u32 %v3549_v41, %v3218_v40  ;;  %v3135_v51 = vor.u32 %v3526_v47, %v3132_v48  ;;  %v3202_v52 = vld [vmem:[#allocation4 + $0x1c0] sm:$0xf]  ;;  %v3188_v47 = vld [vmem:[#allocation4 + $0x1a8] sm:$0xf0] }
  0xf1   :  { %v3203_v9 = vor.u32 %v3545_v53, %v3202_v52  ;;  %v3180_v52 = vld [vmem:[#allocation4 + $0x198] sm:$0xf0] }
  0xf2   :  { %1979 = vmatpush.bf16.msra.mxu3 %v3219_v42  ;;  %v3544_v42 = vld [vmem:[#allocation4 + $0x1c4] sm:$0xf] }
  0xf3   :  { %1972 = vmatpush.bf16.msra.mxu2 %v3107_v24 }
  0xf4   :  { %1992 = vmatpush.bf16.msrb.mxu0 %v3031_v11  ;;  %2005 = vmatpush.bf16.msrb.mxu1 %v3095_v8  ;;  %v1381_v56 = vpop.f32.mrf.mxu3  ;;  %v1344_v62 = vpop.f32.mrf.mxu0 }
  0xf5   :  { %v1368_v50 = vpop.f32.mrf.mxu2  ;;  %v1357_v1 = vpop.f32.mrf.mxu1  ;;  %v3116_v62 = vld [vmem:[#allocation4 + $0x118] sm:$0xf0] }
  0xf6   :  { %v1369_v55 = vadd.f32 %v1368_v50, %v1356_v46  ;;  %v3211_v46 = vor.u32 %v3547_v45, %v3210_v39  ;;  %v3541_v1 = vld [vmem:[#allocation4 + $0x1a4] sm:$0xf0]  ;;  %v3542_v39 = vld [vmem:[#allocation4 + $0x1b4] sm:$0xf]  ;;  %v3196_v45 = vld [vmem:[#allocation4 + $0x1b8] sm:$0xf0] }
  0xf7   :  { %v3187_v12 = vor.u32 %v3541_v1, %v3186_v0 }
  0xf8   :  { %1993 = vmatpush.bf16.msrb.mxu0 %v3023_v32  ;;  %2006 = vmatpush.bf16.msrb.mxu1 %v3087_v35  ;;  %v1382_v25 = vadd.f32 %v1381_v56, %v1369_v55  ;;  %v3164_v32 = vld [vmem:[#allocation4 + $0x178] sm:$0xf0]  ;;  %v3524_v55 = vld [vmem:[#allocation4 + $0x124] sm:$0xf] }
  0xf9   :  { %v3167_v35 = vor.u32 %v3534_v15, %v3164_v32  ;;  %1980 = vmatpush.bf16.msra.mxu3 %v3211_v46  ;;  %v3127_v59 = vor.u32 %v3524_v55, %v3124_v57  ;;  %v3228_v15 = vld [vmem:[#allocation4 + $0x1f8] sm:$0xf0]  ;;  %v3199_v46 = vor.u32 %v3542_v39, %v3196_v45  ;;  %v3536_v55 = vld [vmem:[#allocation4 + $0x184] sm:$0xf] }
  0xfa   :  { %v1542_v3 = vmax.f32 %v1382_v25, 0.0  ;;  %v3543_v25 = vld [vmem:[#allocation4 + $0x1b4] sm:$0xf0]  ;;  %v3560_v39 = vld [vmem:[%s3814_s5 + $0x40] sm:$0xff] }
  0xfb   :  { %2017 = vmatpush.bf16.msrb.mxu2 %v3167_v35  ;;  %v3548_v35 = vld [vmem:[#allocation4 + $0x1e4] sm:$0xf] }
  0xfc   :  { %1994 = vmatpush.bf16.msrb.mxu0 %v3015_v31  ;;  %2007 = vmatpush.bf16.msrb.mxu1 %v3079_v33  ;;  %v1546_v11 = vpack.c.bf16 %v1542_v3, %v1542_v3  ;;  %v1383_v18 = vpop.f32.mrf.mxu3  ;;  %v3530_v31 = vld [vmem:[#allocation4 + $0x154] sm:$0xf]  ;;  %v3223_v28 = vor.u32 %v3548_v35, %v3220_v26  ;;  %v3559_v35 = vld [vmem:[%s3814_s5 + $0x38] sm:$0xff] }
  0xfd   :  { %v1370_v8 = vpop.f32.mrf.mxu2  ;;  %v3151_v38 = vor.u32 %v3530_v31, %v3148_v34  ;;  %1981 = vmatpush.bf16.msra.mxu3 %v3203_v9  ;;  %v3170_v18 = vld [vmem:[#allocation4 + $0x180] sm:$0xf]  ;;  %v3212_v31 = vld [vmem:[#allocation4 + $0x1d8] sm:$0xf0]  ;;  %v264_v9 = vperm.slane %v3734_v54, 3  ;;  %v3558_v26 = vld [vmem:[%s3814_s5 + $0x30] sm:$0xff] }
  0xfe   :  { %1960 = vmatmul.bf16.vlgmr.msra.gmra.mxu1 %v1546_v11  ;;  %v3171_v20 = vor.u32 %v3537_v19, %v3170_v18 }
  0xff   :  { %2018 = vmatpush.bf16.msrb.mxu2 %v3159_v21 }
 0x100   :  { %1995 = vmatpush.bf16.msrb.mxu0 %v3007_v37  ;;  %2008 = vmatpush.bf16.msrb.mxu1 %v3071_v49 }
 0x103   :  { %2019 = vmatpush.bf16.msrb.mxu2 %v3151_v38 }
 0x104   :  { %1996 = vmatpush.bf16.msrb.mxu0 %v2999_v58  ;;  %2009 = vmatpush.bf16.msrb.mxu1 %v3063_v61  ;;  %v3194_v58 = vld [vmem:[#allocation4 + $0x1b0] sm:$0xf]  ;;  %v3522_v61 = vld [vmem:[#allocation4 + $0x114] sm:$0xf] }
 0x105   :  { %v3195_v63 = vor.u32 %v3543_v25, %v3194_v58  ;;  %v3119_v2 = vor.u32 %v3522_v61, %v3116_v62 }
 0x107   :  { %1982 = vmatpush.bf16.msra.mxu3 %v3195_v63 }
 0x108   :  { %1997 = vmatpush.bf16.msrb.mxu0 %v2991_v7  ;;  %2010 = vmatpush.bf16.msrb.mxu1 %v3055_v14  ;;  %v3108_v7 = vld [vmem:[#allocation4 + $0x108] sm:$0xf0]  ;;  %v3539_v14 = vld [vmem:[#allocation4 + $0x194] sm:$0xf0] }
 0x109   :  { %v3111_v16 = vor.u32 %v3520_v6, %v3108_v7  ;;  %v3179_v8 = vor.u32 %v3539_v14, %v3178_v13  ;;  %v1613_v14 = vld [vmem:[%s3813_s4] sm:$0x3] }
 0x10b   :  { %1983 = vmatpush.bf16.msra.mxu3 %v3187_v12 }
 0x10c   :  { %1998 = vmatpush.bf16.msrb.mxu0 %v2983_v22  ;;  %2011 = vmatpush.bf16.msrb.mxu1 %v3047_v23  ;;  %v1394_v36 = vpop.f32.mrf.mxu0  ;;  %v1407_v33 = vpop.f32.mrf.mxu1  ;;  %v3550_v22 = vld [vmem:[#allocation4 + $0x1f4] sm:$0xf] }
 0x10d   :  { %v1395_v3 = vadd.f32 %v1394_v36, %v263_v60  ;;  %v3231_v23 = vor.u32 %v3550_v22, %v3228_v15  ;;  %v3215_v36 = vor.u32 %v3546_v30, %v3212_v31  ;;  %v3566_v30 = vld [vmem:[%s3814_s5 + $0x70] sm:$0xff] }
 0x10e   :  { %v3554_v31 = vld [vmem:[%s3814_s5 + $0x10] sm:$0xff] }
 0x10f   :  { %1999 = vmatmul.bf16.vlgmr.msrb.gmra.mxu0 %v3748_v10  ;;  %2012 = vmatmul.bf16.vlgmr.msrb.gmra.mxu1 %v1546_v11  ;;  %v3143_v10 = vor.u32 %v3528_v43, %v3140_v44  ;;  %v1408_v17 = vadd.f32 %v1407_v33, %v1395_v3  ;;  %v3204_v43 = vld [vmem:[#allocation4 + $0x1c8] sm:$0xf0] }
 0x110   :  { %1984 = vmatpush.bf16.msra.mxu3 %v3179_v8  ;;  %2175 = vmatpush.bf16.msra.mxu0 %v3559_v35 }
 0x111   :  { %2020 = vmatpush.bf16.msrb.mxu2 %v3143_v10  ;;  %v3207_v10 = vor.u32 %v3544_v42, %v3204_v43  ;;  %v3563_v42 = vld [vmem:[%s3814_s5 + $0x58] sm:$0xff]  ;;  %v3562_v43 = vld [vmem:[%s3814_s5 + $0x50] sm:$0xff] }
 0x114   :  { %v1396_v49 = vpop.f32.mrf.mxu0  ;;  %v1433_v50 = vpop.f32.mrf.mxu3  ;;  %1985 = vmatpush.bf16.msra.mxu3 %v3171_v20  ;;  %v1616_v20 = vperm.slane %v1613_v14, 1  ;;  %2176 = vmatpush.bf16.msra.mxu0 %v3558_v26 }
 0x115   :  { %v1420_v37 = vpop.f32.mrf.mxu2  ;;  %v1409_v56 = vpop.f32.mrf.mxu1  ;;  %2021 = vmatpush.bf16.msrb.mxu2 %v3135_v51  ;;  %v3538_v51 = vld [vmem:[#allocation4 + $0x194] sm:$0xf] }
 0x116   :  { %v1421_v5 = vadd.f32 %v1420_v37, %v1408_v17  ;;  %v3540_v37 = vld [vmem:[#allocation4 + $0x1a4] sm:$0xf]  ;;  %v3183_v53 = vor.u32 %v3538_v51, %v3180_v52  ;;  %v3172_v56 = vld [vmem:[#allocation4 + $0x188] sm:$0xf0] }
 0x117   :  { %v3191_v49 = vor.u32 %v3540_v37, %v3188_v47  ;;  %v3175_v57 = vor.u32 %v3536_v55, %v3172_v56 }
 0x118   :  { %v1434_v32 = vadd.f32 %v1433_v50, %v1421_v5  ;;  %2030 = vmatpush.bf16.msrb.mxu3 %v3231_v23 }
 0x119   :  { %2022 = vmatpush.bf16.msrb.mxu2 %v3127_v59 }
 0x11c   :  { %v1435_v11 = vpop.f32.mrf.mxu3  ;;  %2031 = vmatpush.bf16.msrb.mxu3 %v3223_v28  ;;  %v3555_v28 = vld [vmem:[%s3814_s5 + $0x18] sm:$0xff] }
 0x11d   :  { %v1422_v4 = vpop.f32.mrf.mxu2  ;;  %2023 = vmatpush.bf16.msrb.mxu2 %v3119_v2 }
 0x120   :  { %2032 = vmatpush.bf16.msrb.mxu3 %v3215_v36  ;;  %v3553_v36 = vld [vmem:[%s3814_s5 + $0x8] sm:$0xff] }
 0x121   :  { %2024 = vmatpush.bf16.msrb.mxu2 %v3111_v16  ;;  %v1615_v16 = vperm.slane %v1613_v14, 0 }
 0x124   :  { %2033 = vmatpush.bf16.msrb.mxu3 %v3207_v10  ;;  %v3561_v10 = vld [vmem:[%s3814_s5 + $0x48] sm:$0xff] }
 0x128   :  { %2034 = vmatpush.bf16.msrb.mxu3 %v3199_v46 }
 0x12c   :  { %v1446_v24 = vpop.f32.mrf.mxu0  ;;  %v1459_v21 = vpop.f32.mrf.mxu1  ;;  %2035 = vmatpush.bf16.msrb.mxu3 %v3191_v49 }
 0x12d   :  { %v1447_v27 = vadd.f32 %v1446_v24, %v1434_v32 }
 0x12f   :  { %v1460_v29 = vadd.f32 %v1459_v21, %v1447_v27  ;;  %v3557_v27 = vld [vmem:[%s3814_s5 + $0x28] sm:$0xff]  ;;  %v3556_v21 = vld [vmem:[%s3814_s5 + $0x20] sm:$0xff] }
 0x130   :  { %2036 = vmatpush.bf16.msrb.mxu3 %v3183_v53  ;;  %2177 = vmatpush.bf16.msra.mxu0 %v3557_v27 }
 0x131   :  { %v1543_v34 = vmax.f32 %v1460_v29, 0.0  ;;  %v3567_v29 = vld [vmem:[%s3814_s5 + $0x78] sm:$0xff] }
 0x132   :  { %2188 = vmatpush.bf16.msra.mxu1 %v3567_v29 }
 0x133   :  { %v1547_v38 = vpack.c.bf16 %v1543_v34, %v1543_v34 }
 0x134   :  { %v1485_v40 = vpop.f32.mrf.mxu3  ;;  %v1448_v41 = vpop.f32.mrf.mxu0  ;;  %2037 = vmatpush.bf16.msrb.mxu3 %v3175_v57  ;;  %2178 = vmatpush.bf16.msra.mxu0 %v3556_v21 }
 0x135   :  { %v1472_v33 = vpop.f32.mrf.mxu2  ;;  %1973 = vmatmul.bf16.vlgmr.msra.gmra.mxu2 %v1547_v38  ;;  %v1461_v44 = vpop.f32.mrf.mxu1 }
 0x136   :  { %v1473_v58 = vadd.f32 %v1472_v33, %v264_v9  ;;  %2189 = vmatpush.bf16.msra.mxu1 %v3566_v30  ;;  %v3552_v33 = vld [vmem:[%s3814_s5] sm:$0xff] }
 0x138   :  { %v1486_v25 = vadd.f32 %v1485_v40, %v1473_v58  ;;  %2179 = vmatpush.bf16.msra.mxu0 %v3555_v28  ;;  %v3564_v40 = vld [vmem:[%s3814_s5 + $0x60] sm:$0xff] }
 0x13c   :  { %v1487_v50 = vpop.f32.mrf.mxu3  ;;  %2180 = vmatpush.bf16.msra.mxu0 %v3554_v31 }
 0x13d   :  { %v1474_v48 = vpop.f32.mrf.mxu2 }
 0x140   :  { %2181 = vmatpush.bf16.msra.mxu0 %v3553_v36 }
 0x144   :  { %2182 = vmatpush.bf16.msra.mxu0 %v3552_v33 }
 0x145   :  { %2025 = vmatmul.bf16.vlgmr.msrb.gmra.mxu2 %v1547_v38  ;;  %v3565_v38 = vld [vmem:[%s3814_s5 + $0x68] sm:$0xff] }
 0x146   :  { %2190 = vmatpush.bf16.msra.mxu1 %v3565_v38 }
 0x14a   :  { %2191 = vmatpush.bf16.msra.mxu1 %v3564_v40 }
 0x14c   :  { %v1498_v59 = vpop.f32.mrf.mxu0  ;;  %v1511_v60 = vpop.f32.mrf.mxu1 }
 0x14d   :  { %v1499_v61 = vadd.f32 %v1498_v59, %v1486_v25 }
 0x14e   :  { %2192 = vmatpush.bf16.msra.mxu1 %v3563_v42 }
 0x14f   :  { %v1512_v62 = vadd.f32 %v1511_v60, %v1499_v61 }
 0x152   :  { %2193 = vmatpush.bf16.msra.mxu1 %v3562_v43 }
 0x154   :  { %v1524_v63 = vpop.f32.mrf.mxu2  ;;  %v1537_v1 = vpop.f32.mrf.mxu3 }
 0x155   :  { %v1525_v0 = vadd.f32 %v1524_v63, %v1512_v62  ;;  %v1500_v2 = vpop.f32.mrf.mxu0  ;;  %v1513_v3 = vpop.f32.mrf.mxu1 }
 0x156   :  { %2194 = vmatpush.bf16.msra.mxu1 %v3561_v10 }
 0x157   :  { %v1538_v4 = vadd.f32 %v1537_v1, %v1525_v0 }
 0x159   :  { %v1544_v6 = vmax.f32 %v1538_v4, 0.0 }
 0x15a   :  { %2195 = vmatpush.bf16.msra.mxu1 %v3560_v39 }
 0x15b   :  { %v1548_v7 = vpack.c.bf16 %v1544_v6, %v1544_v6 }
 0x15c   :  { %v1526_v11 = vpop.f32.mrf.mxu2  ;;  %v1539_v54 = vpop.f32.mrf.mxu3 }
 0x15d   :  { %1986 = vmatmul.bf16.vlgmr.msra.gmra.mxu3 %v1548_v7 }
 0x16c   :  { %v1948_v12 = vpop.f32.mrf.mxu0 }
 0x16d   :  { %2038 = vmatmul.bf16.vlgmr.msrb.gmra.mxu3 %v1548_v7  ;;  %v1949_v17 = vadd.f32 %v1948_v12, %v1615_v16 }
 0x174   :  { %v1950_v13 = vpop.f32.mrf.mxu0 }
 0x17b   :  { %v1961_v8 = vpop.f32.mrf.mxu1 }
 0x17c   :  { %v1962_v5 = vadd.f32 %v1961_v8, %v1949_v17 }
 0x183   :  { %v1963_v19 = vpop.f32.mrf.mxu1 }
 0x18c   :  { %v2000_v18 = vpop.f32.mrf.mxu0  ;;  %v2013_v32 = vpop.f32.mrf.mxu1 }
 0x18d   :  { %v2001_v22 = vadd.f32 %v2000_v18, %v1616_v20 }
 0x18f   :  { %v2014_v23 = vadd.f32 %v2013_v32, %v2001_v22 }
 0x194   :  { %v2002_v15 = vpop.f32.mrf.mxu0  ;;  %v2015_v24 = vpop.f32.mrf.mxu1 }
 0x1b8   :  { %v1974_v34 = vpop.f32.mrf.mxu2 }
 0x1b9   :  { %v1975_v46 = vadd.f32 %v1974_v34, %v1962_v5 }
 0x1c0   :  { %v1976_v41 = vpop.f32.mrf.mxu2 }
 0x1c8   :  { %v2026_v44 = vpop.f32.mrf.mxu2 }
 0x1c9   :  { %v2027_v51 = vadd.f32 %v2026_v44, %v2014_v23 }
 0x1d0   :  { %v2028_v45 = vpop.f32.mrf.mxu2 }
 0x1e0   :  { %v1987_v37 = vpop.f32.mrf.mxu3 }
 0x1e1   :  { %v1988_v47 = vadd.f32 %v1987_v37, %v1975_v46 }
 0x1e3   :  { %v2043_v48 = vmax.f32 %v1988_v47, 0.0 }
 0x1e5   :  { %v2045_v49 = vpack.c.bf16 %v2043_v48, %v2043_v48 }
 0x1e7   :  { %2183 = vmatmul.bf16.vlgmr.msra.gmra.mxu0 %v2045_v49 }
 0x1e8   :  { %v1989_v50 = vpop.f32.mrf.mxu3 }
 0x1f0   :  { %v2039_v52 = vpop.f32.mrf.mxu3 }
 0x1f1   :  { %v2040_v53 = vadd.f32 %v2039_v52, %v2027_v51 }
 0x1f3   :  { %v2044_v55 = vmax.f32 %v2040_v53, 0.0 }
 0x1f5   :  { %v2046_v56 = vpack.c.bf16 %v2044_v55, %v2044_v55 }
 0x1f7   :  { %2196 = vmatmul.bf16.vlgmr.msra.gmra.mxu1 %v2046_v56 }
 0x1f8   :  { %v2041_v9 = vpop.f32.mrf.mxu3 }
 0x264   :  { %v2184_v57 = vpop.f32.mrf.mxu0 }
 0x26c   :  { %v2186_v58 = vpop.f32.mrf.mxu0 }
 0x274   :  { %v2197_v25 = vpop.f32.mrf.mxu1 }
 0x275   :  { %v2198_v59 = vadd.f32 %v2197_v25, %v2184_v57 }
 0x277   :  { %2201 = vst [vmem:[%s3815_s6] sm:$0xff] %v2198_v59 }
 0x27c   :  { %v2199_v60 = vpop.f32.mrf.mxu1 }
 0x27d   :  { %2206 = vsyncpa [#allocation3], 1 }
 0x27e   :  { %2207 = vsyncpa [#allocation5], 1 }

</bundles_post_ra>
